<compile_context>
chip_gen: v5e
topology: v5e:2x2
jax: 0.10.0
libtpu: 0.0.40
codegen_flags: <defaults>
</compile_context>

<pallas_src>
import functools

import jax
import jax.numpy as jnp
import numpy as np
from jax.experimental import pallas as pl
from jax.experimental.pallas import tpu as pltpu

# ----------------------------------------------------------------------------- config
HEAD_SIZE = [128, 64, 32]          # scaled-down version of [2048, 512, 128]
LAMBDA_PARAM = 0.005
BN_EPS = 1e-5
KSIZE = 3


# ----------------------------------------------------------------------------- kernels
def _backbone_kernel(cols_ref, wconv_ref, pool_ref, feat_ref):
    """One image-block of the stand-in backbone: 3x3 conv (single im2col matmul) + ReLU + GAP."""
    # (rows_block, 9C) bf16 @ (9C, F0) bf16 -> f32 accumulation. Single dot (no scratch +=).
    conv = jnp.dot(cols_ref[...], wconv_ref[...], preferred_element_type=jnp.float32)
    relu = jnp.maximum(conv, 0.0).astype(jnp.bfloat16)
    # Global average pool as one MXU matmul; pool carries 1/(H*W) per image of the block.
    feat_ref[...] = jnp.dot(pool_ref[...], relu, preferred_element_type=jnp.float32)


def _head_kernel(feat_ref, w1_ref, g1_ref, b1_ref, w2_ref, g2_ref, b2_ref,
                 w3_ref, b3_ref, loss_ref, *, n, d, lam):
    """Projector (per view, shared weights) + Barlow-Twins loss."""

    def bn_relu(hh, g, b):
        # BatchNorm1d training semantics: biased variance, eps inside rsqrt, f32 statistics.
        mu = jnp.mean(hh, axis=0, keepdims=True)
        var = jnp.mean((hh - mu) ** 2, axis=0, keepdims=True)
        return jnp.maximum((hh - mu) * jax.lax.rsqrt(var + BN_EPS) * g + b, 0.0)

    def project(f):  # f: (n, F0) f32 -- one view; BN statistics stay per view.
        h = bn_relu(jnp.dot(f.astype(jnp.bfloat16), w1_ref[...],
                            preferred_element_type=jnp.float32), g1_ref[...], b1_ref[...])
        h = bn_relu(jnp.dot(h.astype(jnp.bfloat16), w2_ref[...],
                            preferred_element_type=jnp.float32), g2_ref[...], b2_ref[...])
        return jnp.dot(h.astype(jnp.bfloat16), w3_ref[...],
                       preferred_element_type=jnp.float32) + b3_ref[...]

    z1 = project(feat_ref[:n, :])          # view 1 rows
    z2 = project(feat_ref[n:2 * n, :])     # view 2 rows

    def normalize(z):
        zc = z - jnp.mean(z, axis=0, keepdims=True)
        # torch.std semantics: unbiased (ddof=1), no epsilon (documented fragility at tiny n).
        return zc * jax.lax.rsqrt(jnp.sum(zc * zc, axis=0, keepdims=True) / (n - 1))

    za = normalize(z1)
    zb = normalize(z2)
    # contract on axis 0 of both operands -> z_a_norm.T @ z_b_norm without explicit transpose
    c = jax.lax.dot_general(za, zb, (((0,), (0,)), ((), ())),
                            preferred_element_type=jnp.float32) * (1.0 / n)
    row = jax.lax.broadcasted_iota(jnp.int32, (d, d), 0)
    col = jax.lax.broadcasted_iota(jnp.int32, (d, d), 1)
    diag = row == col
    cdiff = (c - diag.astype(jnp.float32)) ** 2
    cdiff = jnp.where(diag, cdiff, cdiff * lam)
    loss_ref[...] = jnp.sum(cdiff).reshape(1, 1)


# ----------------------------------------------------------------------------- wrapper glue
def _im2col(x):
    """(B, C, H, W) -> (B*H*W, 9*C) patches for a 3x3 'same' conv, (tap, channel) column order."""
    b, c, h, w = x.shape
    xp = jnp.pad(x, ((0, 0), (0, 0), (1, 1), (1, 1)))
    taps = []
    for k in range(KSIZE * KSIZE):
        di, dj = k // KSIZE, k % KSIZE
        taps.append(xp[:, :, di:di + h, dj:dj + w])        # (B, C, H, W)
    cols = jnp.stack(taps, axis=1)                          # (B, 9, C, H, W)
    cols = cols.transpose(0, 3, 4, 1, 2)                    # (B, H, W, 9, C)
    return cols.reshape(b * h * w, KSIZE * KSIZE * c)


def _pool_matrix(img_block, hw):
    """(img_block, img_block*hw) constant: 1/(H*W) over the contiguous rows of each image."""
    m = np.zeros((img_block, img_block * hw), np.float32)
    for i in range(img_block):
        m[i, i * hw:(i + 1) * hw] = 1.0 / hw                # 1/256 exact in bf16
    return jnp.asarray(m, jnp.bfloat16)


@jax.jit
def barlow_twins_forward(x1, x2, params):
    n, c, h, w = x1.shape
    hw = h * w
    f0 = params["conv_w"].shape[-1]
    d = params["w3"].shape[-1]
    kc = KSIZE * KSIZE * c

    # Views stacked along the batch (sublane) axis -> shared weights, no block-diagonal zeros.
    x = jnp.concatenate([x1, x2], axis=0)                   # (2N, C, H, W)
    cols = _im2col(x).astype(jnp.bfloat16)                  # (2N*H*W, 9C) bf16
    wconv = params["conv_w"].reshape(kc, f0).astype(jnp.bfloat16)

    two_n = 2 * n
    img_block = 8 if two_n % 8 == 0 else two_n              # f32 feature block needs >=8 sublanes
    rows_block = img_block * hw
    grid = (two_n // img_block,)
    pool = _pool_matrix(img_block, hw)                      # (img_block, rows_block) bf16

    # ---- backbone: tiled over image blocks, 'parallel' axis (megacore / v7x 2nd TC) ----------
    feat = pl.pallas_call(
        _backbone_kernel,
        out_shape=jax.ShapeDtypeStruct((two_n, f0), jnp.float32),
        grid=grid,
        in_specs=[
            pl.BlockSpec((rows_block, kc), lambda b: (b, 0)),        # im2col rows of the block
            pl.BlockSpec((kc, f0), lambda b: (0, 0)),                # conv weight (resident)
            pl.BlockSpec((img_block, rows_block), lambda b: (0, 0)),  # pooling matrix (resident)
        ],
        out_specs=pl.BlockSpec((img_block, f0), lambda b: (b, 0)),   # lane-dense (F0=128) output
        compiler_params=pltpu.CompilerParams(
            dimension_semantics=("parallel",),
            vmem_limit_bytes=16 * 1024 * 1024),
    )(cols, wconv, pool)

    # ---- projector + Barlow-Twins loss (needs all features) ----------------------------------
    head = functools.partial(_head_kernel, n=n, d=d, lam=LAMBDA_PARAM)
    loss = pl.pallas_call(
        head,
        out_shape=jax.ShapeDtypeStruct((1, 1), jnp.float32),
        in_specs=[pl.BlockSpec(memory_space=pltpu.MemorySpace.VMEM)] * 9,
        out_specs=pl.BlockSpec(memory_space=pltpu.MemorySpace.VMEM),
        compiler_params=pltpu.CompilerParams(vmem_limit_bytes=8 * 1024 * 1024),
    )(feat,
      params["w1"].astype(jnp.bfloat16), params["g1"], params["b1"],
      params["w2"].astype(jnp.bfloat16), params["g2"], params["b2"],
      params["w3"].astype(jnp.bfloat16), params["b3"])
    return loss[0, 0]


# ----------------------------------------------------------------------------- reference (plain JAX, f32)
def _reference_forward(x1, x2, params):
    def backbone(x):
        nb, cb, hb, wb = x.shape
        xp = jnp.pad(x, ((0, 0), (0, 0), (1, 1), (1, 1)))
        wk = params["conv_w"]
        out = jnp.zeros((nb, hb, wb, wk.shape[-1]), jnp.float32)
        for k in range(KSIZE * KSIZE):
            di, dj = k // KSIZE - 1, k % KSIZE - 1
            patch = xp[:, :, 1 + di:1 + di + hb, 1 + dj:1 + dj + wb]
            out = out + jnp.einsum("nchw,cf->nhwf", patch, wk[k])
        out = jnp.maximum(out, 0.0)
        return jnp.mean(out, axis=(1, 2))

    def projector(f):
        hh = f @ params["w1"]
        m = hh.mean(0, keepdims=True)
        v = ((hh - m) ** 2).mean(0, keepdims=True)
        hh = jnp.maximum((hh - m) * jax.lax.rsqrt(v + BN_EPS) * params["g1"] + params["b1"], 0.0)
        hh = hh @ params["w2"]
        m = hh.mean(0, keepdims=True)
        v = ((hh - m) ** 2).mean(0, keepdims=True)
        hh = jnp.maximum((hh - m) * jax.lax.rsqrt(v + BN_EPS) * params["g2"] + params["b2"], 0.0)
        return hh @ params["w3"] + params["b3"]

    z1 = projector(backbone(x1))
    z2 = projector(backbone(x2))
    nb, dd = z1.shape
    za = (z1 - z1.mean(0)) / jnp.std(z1, axis=0, ddof=1)
    zb = (z2 - z2.mean(0)) / jnp.std(z2, axis=0, ddof=1)
    corr = za.T @ zb / nb
    eye = jnp.eye(dd)
    c_diff = (corr - eye) ** 2
    c_diff = jnp.where(eye > 0, c_diff, c_diff * LAMBDA_PARAM)
    return jnp.sum(c_diff)


# ----------------------------------------------------------------------------- params
def init_params(key, in_ch=3, head_size=HEAD_SIZE):
    k = jax.random.split(key, 4)
    f0, f1, f2 = head_size

    def lin(kk, fan_in, shape):
        return jax.random.normal(kk, shape, jnp.float32) / np.sqrt(fan_in)

    return {
        "conv_w": lin(k[0], in_ch * KSIZE * KSIZE, (KSIZE * KSIZE, in_ch, f0)),
        "w1": lin(k[1], f0, (f0, f1)),
        "g1": jnp.ones((1, f1), jnp.float32), "b1": jnp.zeros((1, f1), jnp.float32),
        "w2": lin(k[2], f1, (f1, f1)),
        "g2": jnp.ones((1, f1), jnp.float32), "b2": jnp.zeros((1, f1), jnp.float32),
        "w3": lin(k[3], f1, (f1, f2)),
        "b3": jnp.zeros((1, f2), jnp.float32),
    }


# ----------------------------------------------------------------------------- main
if __name__ == "__main__":
    key = jax.random.PRNGKey(0)
    kx1, kx2, kp = jax.random.split(key, 3)

    N, C, H, W = 8, 3, 16, 16
    x1 = jax.random.normal(kx1, (N, C, H, W), jnp.float32)   # NCHW, like PyTorch
    x2 = jax.random.normal(kx2, (N, C, H, W), jnp.float32)
    params = init_params(kp, in_ch=C, head_size=HEAD_SIZE)

    loss = jax.block_until_ready(barlow_twins_forward(x1, x2, params))

    loss_ref = _reference_forward(x1, x2, params)
    # bf16 matmul operands (f32 accumulation) vs the f32 reference -> ~1% expected deviation.
    np.testing.assert_allclose(np.asarray(loss), np.asarray(loss_ref),
                               rtol=5e-2, atol=5e-2)
    assert np.isfinite(np.asarray(loss))
    print("KERNEL_OK")
</pallas_src>

<mosaic_0001>
module attributes {stable_mosaic.version = 11 : i64} {
  func.func @_backbone_kernel(%arg0: i32, %arg1: memref<2048x27xbf16, #tpu.memory_space<vmem>>, %arg2: memref<27x128xbf16, #tpu.memory_space<vmem>>, %arg3: memref<8x2048xbf16, #tpu.memory_space<vmem>>, %arg4: memref<8x128xf32, #tpu.memory_space<vmem>>) attributes {dimension_semantics = [#tpu.dimension_semantics<parallel>], iteration_bounds = array<i64: 2>, scalar_prefetch = 0 : i64, scratch_operands = 0 : i64, tpu.core_type = #tpu.core_type<tc>, window_params = [{transform_indices = @transform_0, window_bounds = array<i64: 2048, 27>}, {pipeline_mode = #tpu.pipeline_mode<synchronous>, transform_indices = @transform_1, window_bounds = array<i64: 27, 128>}, {pipeline_mode = #tpu.pipeline_mode<synchronous>, transform_indices = @transform_2, window_bounds = array<i64: 8, 2048>}, {transform_indices = @transform_3, window_bounds = array<i64: 8, 128>}]} {
    %c0 = arith.constant 0 : index
    %c0_0 = arith.constant 0 : index
    %0 = vector.load %arg1[%c0, %c0_0] : memref<2048x27xbf16, #tpu.memory_space<vmem>>, vector<2048x27xbf16>
    %c0_1 = arith.constant 0 : index
    %c0_2 = arith.constant 0 : index
    %1 = vector.load %arg2[%c0_1, %c0_2] : memref<27x128xbf16, #tpu.memory_space<vmem>>, vector<27x128xbf16>
    %cst = arith.constant dense<0.000000e+00> : vector<2048x128xf32>
    %2 = tpu.matmul %0, %1, %cst {dimension_numbers = #tpu.dot_dimension_numbers<[1], [0], [0], [1], [0, 0, 1, 1], [], []>} : vector<2048x27xbf16>, vector<27x128xbf16>, vector<2048x128xf32> -> vector<2048x128xf32>
    %cst_3 = arith.constant 0.000000e+00 : f32
    %3 = vector.broadcast %cst_3 : f32 to vector<2048x128xf32>
    %4 = arith.maximumf %2, %3 : vector<2048x128xf32>
    %5 = arith.truncf %4 : vector<2048x128xf32> to vector<2048x128xbf16>
    %c0_4 = arith.constant 0 : index
    %c0_5 = arith.constant 0 : index
    %6 = vector.load %arg3[%c0_4, %c0_5] : memref<8x2048xbf16, #tpu.memory_space<vmem>>, vector<8x2048xbf16>
    %cst_6 = arith.constant dense<0.000000e+00> : vector<8x128xf32>
    %7 = tpu.matmul %6, %5, %cst_6 {dimension_numbers = #tpu.dot_dimension_numbers<[1], [0], [0], [1], [0, 0, 1, 1], [], []>} : vector<8x2048xbf16>, vector<2048x128xbf16>, vector<8x128xf32> -> vector<8x128xf32>
    %c0_7 = arith.constant 0 : index
    %c0_8 = arith.constant 0 : index
    %8 = vector.load %arg4[%c0_7, %c0_8] : memref<8x128xf32, #tpu.memory_space<vmem>>, vector<8x128xf32>
    tpu.vector_store %arg4[%c0_7, %c0_8], %7 {strides = array<i32>} : memref<8x128xf32, #tpu.memory_space<vmem>>, vector<8x128xf32>,
    return
  }
  func.func @transform_0(%arg0: i32) -> (i32, i32) {
    %c0_i32 = arith.constant 0 : i32
    %c0_i32_0 = arith.constant 0 : i32
    return %arg0, %c0_i32 : i32, i32
  }
  func.func @transform_1(%arg0: i32) -> (i32, i32) {
    %c0_i32 = arith.constant 0 : i32
    %c0_i32_0 = arith.constant 0 : i32
    %c0_i32_1 = arith.constant 0 : i32
    return %c0_i32, %c0_i32_0 : i32, i32
  }
  func.func @transform_2(%arg0: i32) -> (i32, i32) {
    %c0_i32 = arith.constant 0 : i32
    %c0_i32_0 = arith.constant 0 : i32
    %c0_i32_1 = arith.constant 0 : i32
    return %c0_i32, %c0_i32_0 : i32, i32
  }
  func.func @transform_3(%arg0: i32) -> (i32, i32) {
    %c0_i32 = arith.constant 0 : i32
    %c0_i32_0 = arith.constant 0 : i32
    return %arg0, %c0_i32 : i32, i32
  }
}

module attributes {stable_mosaic.version = 11 : i64} {
  func.func @_head_kernel(%arg0: memref<16x128xf32, #tpu.memory_space<vmem>>, %arg1: memref<128x64xbf16, #tpu.memory_space<vmem>>, %arg2: memref<1x64xf32, #tpu.memory_space<vmem>>, %arg3: memref<1x64xf32, #tpu.memory_space<vmem>>, %arg4: memref<64x64xbf16, #tpu.memory_space<vmem>>, %arg5: memref<1x64xf32, #tpu.memory_space<vmem>>, %arg6: memref<1x64xf32, #tpu.memory_space<vmem>>, %arg7: memref<64x32xbf16, #tpu.memory_space<vmem>>, %arg8: memref<1x32xf32, #tpu.memory_space<vmem>>, %arg9: memref<1x1xf32, #tpu.memory_space<vmem>>) attributes {dimension_semantics = [], scalar_prefetch = 0 : i64, scratch_operands = 0 : i64, tpu.core_type = #tpu.core_type<tc>} {
    %c0 = arith.constant 0 : index
    %c0_0 = arith.constant 0 : index
    %0 = vector.load %arg0[%c0, %c0_0] : memref<16x128xf32, #tpu.memory_space<vmem>>, vector<8x128xf32>
    %1 = arith.truncf %0 : vector<8x128xf32> to vector<8x128xbf16>
    %c0_1 = arith.constant 0 : index
    %c0_2 = arith.constant 0 : index
    %2 = vector.load %arg1[%c0_1, %c0_2] : memref<128x64xbf16, #tpu.memory_space<vmem>>, vector<128x64xbf16>
    %cst = arith.constant dense<0.000000e+00> : vector<8x64xf32>
    %3 = tpu.matmul %1, %2, %cst {dimension_numbers = #tpu.dot_dimension_numbers<[1], [0], [0], [1], [0, 0, 1, 1], [], []>} : vector<8x128xbf16>, vector<128x64xbf16>, vector<8x64xf32> -> vector<8x64xf32>
    %c0_3 = arith.constant 0 : index
    %c0_4 = arith.constant 0 : index
    %4 = vector.load %arg2[%c0_3, %c0_4] : memref<1x64xf32, #tpu.memory_space<vmem>>, vector<1x64xf32>
    %c0_5 = arith.constant 0 : index
    %c0_6 = arith.constant 0 : index
    %5 = vector.load %arg3[%c0_5, %c0_6] : memref<1x64xf32, #tpu.memory_space<vmem>>, vector<1x64xf32>
    %cst_7 = arith.constant dense<0.000000e+00> : vector<64xf32>
    %6 = vector.multi_reduction <add>, %3, %cst_7 [0] : vector<8x64xf32> to vector<64xf32>
    %7 = vector.shape_cast %6 : vector<64xf32> to vector<1x64xf32>
    %cst_8 = arith.constant 8.000000e+00 : f32
    %8 = vector.broadcast %cst_8 : f32 to vector<1x64xf32>
    %9 = arith.divf %7, %8 : vector<1x64xf32>
    %10 = vector.broadcast %9 : vector<1x64xf32> to vector<8x64xf32>
    %11 = arith.subf %3, %10 : vector<8x64xf32>
    %12 = arith.mulf %11, %11 : vector<8x64xf32>
    %cst_9 = arith.constant dense<0.000000e+00> : vector<64xf32>
    %13 = vector.multi_reduction <add>, %12, %cst_9 [0] : vector<8x64xf32> to vector<64xf32>
    %14 = vector.shape_cast %13 : vector<64xf32> to vector<1x64xf32>
    %cst_10 = arith.constant 8.000000e+00 : f32
    %15 = vector.broadcast %cst_10 : f32 to vector<1x64xf32>
    %16 = arith.divf %14, %15 : vector<1x64xf32>
    %17 = vector.broadcast %9 : vector<1x64xf32> to vector<8x64xf32>
    %18 = arith.subf %3, %17 : vector<8x64xf32>
    %cst_11 = arith.constant 9.99999974E-6 : f32
    %19 = vector.broadcast %cst_11 : f32 to vector<1x64xf32>
    %20 = arith.addf %16, %19 : vector<1x64xf32>
    %21 = math.rsqrt %20 : vector<1x64xf32>
    %22 = vector.broadcast %21 : vector<1x64xf32> to vector<8x64xf32>
    %23 = arith.mulf %18, %22 : vector<8x64xf32>
    %24 = vector.broadcast %4 : vector<1x64xf32> to vector<8x64xf32>
    %25 = arith.mulf %23, %24 : vector<8x64xf32>
    %26 = vector.broadcast %5 : vector<1x64xf32> to vector<8x64xf32>
    %27 = arith.addf %25, %26 : vector<8x64xf32>
    %cst_12 = arith.constant 0.000000e+00 : f32
    %28 = vector.broadcast %cst_12 : f32 to vector<8x64xf32>
    %29 = arith.maximumf %27, %28 : vector<8x64xf32>
    %30 = arith.truncf %29 : vector<8x64xf32> to vector<8x64xbf16>
    %c0_13 = arith.constant 0 : index
    %c0_14 = arith.constant 0 : index
    %31 = vector.load %arg4[%c0_13, %c0_14] : memref<64x64xbf16, #tpu.memory_space<vmem>>, vector<64x64xbf16>
    %cst_15 = arith.constant dense<0.000000e+00> : vector<8x64xf32>
    %32 = tpu.matmul %30, %31, %cst_15 {dimension_numbers = #tpu.dot_dimension_numbers<[1], [0], [0], [1], [0, 0, 1, 1], [], []>} : vector<8x64xbf16>, vector<64x64xbf16>, vector<8x64xf32> -> vector<8x64xf32>
    %c0_16 = arith.constant 0 : index
    %c0_17 = arith.constant 0 : index
    %33 = vector.load %arg5[%c0_16, %c0_17] : memref<1x64xf32, #tpu.memory_space<vmem>>, vector<1x64xf32>
    %c0_18 = arith.constant 0 : index
    %c0_19 = arith.constant 0 : index
    %34 = vector.load %arg6[%c0_18, %c0_19] : memref<1x64xf32, #tpu.memory_space<vmem>>, vector<1x64xf32>
    %cst_20 = arith.constant dense<0.000000e+00> : vector<64xf32>
    %35 = vector.multi_reduction <add>, %32, %cst_20 [0] : vector<8x64xf32> to vector<64xf32>
    %36 = vector.shape_cast %35 : vector<64xf32> to vector<1x64xf32>
    %cst_21 = arith.constant 8.000000e+00 : f32
    %37 = vector.broadcast %cst_21 : f32 to vector<1x64xf32>
    %38 = arith.divf %36, %37 : vector<1x64xf32>
    %39 = vector.broadcast %38 : vector<1x64xf32> to vector<8x64xf32>
    %40 = arith.subf %32, %39 : vector<8x64xf32>
    %41 = arith.mulf %40, %40 : vector<8x64xf32>
    %cst_22 = arith.constant dense<0.000000e+00> : vector<64xf32>
    %42 = vector.multi_reduction <add>, %41, %cst_22 [0] : vector<8x64xf32> to vector<64xf32>
    %43 = vector.shape_cast %42 : vector<64xf32> to vector<1x64xf32>
    %cst_23 = arith.constant 8.000000e+00 : f32
    %44 = vector.broadcast %cst_23 : f32 to vector<1x64xf32>
    %45 = arith.divf %43, %44 : vector<1x64xf32>
    %46 = vector.broadcast %38 : vector<1x64xf32> to vector<8x64xf32>
    %47 = arith.subf %32, %46 : vector<8x64xf32>
    %cst_24 = arith.constant 9.99999974E-6 : f32
    %48 = vector.broadcast %cst_24 : f32 to vector<1x64xf32>
    %49 = arith.addf %45, %48 : vector<1x64xf32>
    %50 = math.rsqrt %49 : vector<1x64xf32>
    %51 = vector.broadcast %50 : vector<1x64xf32> to vector<8x64xf32>
    %52 = arith.mulf %47, %51 : vector<8x64xf32>
    %53 = vector.broadcast %33 : vector<1x64xf32> to vector<8x64xf32>
    %54 = arith.mulf %52, %53 : vector<8x64xf32>
    %55 = vector.broadcast %34 : vector<1x64xf32> to vector<8x64xf32>
    %56 = arith.addf %54, %55 : vector<8x64xf32>
    %cst_25 = arith.constant 0.000000e+00 : f32
    %57 = vector.broadcast %cst_25 : f32 to vector<8x64xf32>
    %58 = arith.maximumf %56, %57 : vector<8x64xf32>
    %59 = arith.truncf %58 : vector<8x64xf32> to vector<8x64xbf16>
    %c0_26 = arith.constant 0 : index
    %c0_27 = arith.constant 0 : index
    %60 = vector.load %arg7[%c0_26, %c0_27] : memref<64x32xbf16, #tpu.memory_space<vmem>>, vector<64x32xbf16>
    %cst_28 = arith.constant dense<0.000000e+00> : vector<8x32xf32>
    %61 = tpu.matmul %59, %60, %cst_28 {dimension_numbers = #tpu.dot_dimension_numbers<[1], [0], [0], [1], [0, 0, 1, 1], [], []>} : vector<8x64xbf16>, vector<64x32xbf16>, vector<8x32xf32> -> vector<8x32xf32>
    %c0_29 = arith.constant 0 : index
    %c0_30 = arith.constant 0 : index
    %62 = vector.load %arg8[%c0_29, %c0_30] : memref<1x32xf32, #tpu.memory_space<vmem>>, vector<1x32xf32>
    %63 = vector.broadcast %62 : vector<1x32xf32> to vector<8x32xf32>
    %64 = arith.addf %61, %63 : vector<8x32xf32>
    %c8 = arith.constant 8 : index
    %c0_31 = arith.constant 0 : index
    %65 = vector.load %arg0[%c8, %c0_31] : memref<16x128xf32, #tpu.memory_space<vmem>>, vector<8x128xf32>
    %66 = arith.truncf %65 : vector<8x128xf32> to vector<8x128xbf16>
    %c0_32 = arith.constant 0 : index
    %c0_33 = arith.constant 0 : index
    %67 = vector.load %arg1[%c0_32, %c0_33] : memref<128x64xbf16, #tpu.memory_space<vmem>>, vector<128x64xbf16>
    %cst_34 = arith.constant dense<0.000000e+00> : vector<8x64xf32>
    %68 = tpu.matmul %66, %67, %cst_34 {dimension_numbers = #tpu.dot_dimension_numbers<[1], [0], [0], [1], [0, 0, 1, 1], [], []>} : vector<8x128xbf16>, vector<128x64xbf16>, vector<8x64xf32> -> vector<8x64xf32>
    %c0_35 = arith.constant 0 : index
    %c0_36 = arith.constant 0 : index
    %69 = vector.load %arg2[%c0_35, %c0_36] : memref<1x64xf32, #tpu.memory_space<vmem>>, vector<1x64xf32>
    %c0_37 = arith.constant 0 : index
    %c0_38 = arith.constant 0 : index
    %70 = vector.load %arg3[%c0_37, %c0_38] : memref<1x64xf32, #tpu.memory_space<vmem>>, vector<1x64xf32>
    %cst_39 = arith.constant dense<0.000000e+00> : vector<64xf32>
    %71 = vector.multi_reduction <add>, %68, %cst_39 [0] : vector<8x64xf32> to vector<64xf32>
    %72 = vector.shape_cast %71 : vector<64xf32> to vector<1x64xf32>
    %cst_40 = arith.constant 8.000000e+00 : f32
    %73 = vector.broadcast %cst_40 : f32 to vector<1x64xf32>
    %74 = arith.divf %72, %73 : vector<1x64xf32>
    %75 = vector.broadcast %74 : vector<1x64xf32> to vector<8x64xf32>
    %76 = arith.subf %68, %75 : vector<8x64xf32>
    %77 = arith.mulf %76, %76 : vector<8x64xf32>
    %cst_41 = arith.constant dense<0.000000e+00> : vector<64xf32>
    %78 = vector.multi_reduction <add>, %77, %cst_41 [0] : vector<8x64xf32> to vector<64xf32>
    %79 = vector.shape_cast %78 : vector<64xf32> to vector<1x64xf32>
    %cst_42 = arith.constant 8.000000e+00 : f32
    %80 = vector.broadcast %cst_42 : f32 to vector<1x64xf32>
    %81 = arith.divf %79, %80 : vector<1x64xf32>
    %82 = vector.broadcast %74 : vector<1x64xf32> to vector<8x64xf32>
    %83 = arith.subf %68, %82 : vector<8x64xf32>
    %cst_43 = arith.constant 9.99999974E-6 : f32
    %84 = vector.broadcast %cst_43 : f32 to vector<1x64xf32>
    %85 = arith.addf %81, %84 : vector<1x64xf32>
    %86 = math.rsqrt %85 : vector<1x64xf32>
    %87 = vector.broadcast %86 : vector<1x64xf32> to vector<8x64xf32>
    %88 = arith.mulf %83, %87 : vector<8x64xf32>
    %89 = vector.broadcast %69 : vector<1x64xf32> to vector<8x64xf32>
    %90 = arith.mulf %88, %89 : vector<8x64xf32>
    %91 = vector.broadcast %70 : vector<1x64xf32> to vector<8x64xf32>
    %92 = arith.addf %90, %91 : vector<8x64xf32>
    %cst_44 = arith.constant 0.000000e+00 : f32
    %93 = vector.broadcast %cst_44 : f32 to vector<8x64xf32>
    %94 = arith.maximumf %92, %93 : vector<8x64xf32>
    %95 = arith.truncf %94 : vector<8x64xf32> to vector<8x64xbf16>
    %c0_45 = arith.constant 0 : index
    %c0_46 = arith.constant 0 : index
    %96 = vector.load %arg4[%c0_45, %c0_46] : memref<64x64xbf16, #tpu.memory_space<vmem>>, vector<64x64xbf16>
    %cst_47 = arith.constant dense<0.000000e+00> : vector<8x64xf32>
    %97 = tpu.matmul %95, %96, %cst_47 {dimension_numbers = #tpu.dot_dimension_numbers<[1], [0], [0], [1], [0, 0, 1, 1], [], []>} : vector<8x64xbf16>, vector<64x64xbf16>, vector<8x64xf32> -> vector<8x64xf32>
    %c0_48 = arith.constant 0 : index
    %c0_49 = arith.constant 0 : index
    %98 = vector.load %arg5[%c0_48, %c0_49] : memref<1x64xf32, #tpu.memory_space<vmem>>, vector<1x64xf32>
    %c0_50 = arith.constant 0 : index
    %c0_51 = arith.constant 0 : index
    %99 = vector.load %arg6[%c0_50, %c0_51] : memref<1x64xf32, #tpu.memory_space<vmem>>, vector<1x64xf32>
    %cst_52 = arith.constant dense<0.000000e+00> : vector<64xf32>
    %100 = vector.multi_reduction <add>, %97, %cst_52 [0] : vector<8x64xf32> to vector<64xf32>
    %101 = vector.shape_cast %100 : vector<64xf32> to vector<1x64xf32>
    %cst_53 = arith.constant 8.000000e+00 : f32
    %102 = vector.broadcast %cst_53 : f32 to vector<1x64xf32>
    %103 = arith.divf %101, %102 : vector<1x64xf32>
    %104 = vector.broadcast %103 : vector<1x64xf32> to vector<8x64xf32>
    %105 = arith.subf %97, %104 : vector<8x64xf32>
    %106 = arith.mulf %105, %105 : vector<8x64xf32>
    %cst_54 = arith.constant dense<0.000000e+00> : vector<64xf32>
    %107 = vector.multi_reduction <add>, %106, %cst_54 [0] : vector<8x64xf32> to vector<64xf32>
    %108 = vector.shape_cast %107 : vector<64xf32> to vector<1x64xf32>
    %cst_55 = arith.constant 8.000000e+00 : f32
    %109 = vector.broadcast %cst_55 : f32 to vector<1x64xf32>
    %110 = arith.divf %108, %109 : vector<1x64xf32>
    %111 = vector.broadcast %103 : vector<1x64xf32> to vector<8x64xf32>
    %112 = arith.subf %97, %111 : vector<8x64xf32>
    %cst_56 = arith.constant 9.99999974E-6 : f32
    %113 = vector.broadcast %cst_56 : f32 to vector<1x64xf32>
    %114 = arith.addf %110, %113 : vector<1x64xf32>
    %115 = math.rsqrt %114 : vector<1x64xf32>
    %116 = vector.broadcast %115 : vector<1x64xf32> to vector<8x64xf32>
    %117 = arith.mulf %112, %116 : vector<8x64xf32>
    %118 = vector.broadcast %98 : vector<1x64xf32> to vector<8x64xf32>
    %119 = arith.mulf %117, %118 : vector<8x64xf32>
    %120 = vector.broadcast %99 : vector<1x64xf32> to vector<8x64xf32>
    %121 = arith.addf %119, %120 : vector<8x64xf32>
    %cst_57 = arith.constant 0.000000e+00 : f32
    %122 = vector.broadcast %cst_57 : f32 to vector<8x64xf32>
    %123 = arith.maximumf %121, %122 : vector<8x64xf32>
    %124 = arith.truncf %123 : vector<8x64xf32> to vector<8x64xbf16>
    %c0_58 = arith.constant 0 : index
    %c0_59 = arith.constant 0 : index
    %125 = vector.load %arg7[%c0_58, %c0_59] : memref<64x32xbf16, #tpu.memory_space<vmem>>, vector<64x32xbf16>
    %cst_60 = arith.constant dense<0.000000e+00> : vector<8x32xf32>
    %126 = tpu.matmul %124, %125, %cst_60 {dimension_numbers = #tpu.dot_dimension_numbers<[1], [0], [0], [1], [0, 0, 1, 1], [], []>} : vector<8x64xbf16>, vector<64x32xbf16>, vector<8x32xf32> -> vector<8x32xf32>
    %c0_61 = arith.constant 0 : index
    %c0_62 = arith.constant 0 : index
    %127 = vector.load %arg8[%c0_61, %c0_62] : memref<1x32xf32, #tpu.memory_space<vmem>>, vector<1x32xf32>
    %128 = vector.broadcast %127 : vector<1x32xf32> to vector<8x32xf32>
    %129 = arith.addf %126, %128 : vector<8x32xf32>
    %cst_63 = arith.constant dense<0.000000e+00> : vector<32xf32>
    %130 = vector.multi_reduction <add>, %64, %cst_63 [0] : vector<8x32xf32> to vector<32xf32>
    %131 = vector.shape_cast %130 : vector<32xf32> to vector<1x32xf32>
    %cst_64 = arith.constant 8.000000e+00 : f32
    %132 = vector.broadcast %cst_64 : f32 to vector<1x32xf32>
    %133 = arith.divf %131, %132 : vector<1x32xf32>
    %134 = vector.broadcast %133 : vector<1x32xf32> to vector<8x32xf32>
    %135 = arith.subf %64, %134 : vector<8x32xf32>
    %136 = arith.mulf %135, %135 : vector<8x32xf32>
    %cst_65 = arith.constant dense<0.000000e+00> : vector<32xf32>
    %137 = vector.multi_reduction <add>, %136, %cst_65 [0] : vector<8x32xf32> to vector<32xf32>
    %138 = vector.shape_cast %137 : vector<32xf32> to vector<1x32xf32>
    %cst_66 = arith.constant 7.000000e+00 : f32
    %139 = vector.broadcast %cst_66 : f32 to vector<1x32xf32>
    %140 = arith.divf %138, %139 : vector<1x32xf32>
    %141 = math.rsqrt %140 : vector<1x32xf32>
    %142 = vector.broadcast %141 : vector<1x32xf32> to vector<8x32xf32>
    %143 = arith.mulf %135, %142 : vector<8x32xf32>
    %cst_67 = arith.constant dense<0.000000e+00> : vector<32xf32>
    %144 = vector.multi_reduction <add>, %129, %cst_67 [0] : vector<8x32xf32> to vector<32xf32>
    %145 = vector.shape_cast %144 : vector<32xf32> to vector<1x32xf32>
    %cst_68 = arith.constant 8.000000e+00 : f32
    %146 = vector.broadcast %cst_68 : f32 to vector<1x32xf32>
    %147 = arith.divf %145, %146 : vector<1x32xf32>
    %148 = vector.broadcast %147 : vector<1x32xf32> to vector<8x32xf32>
    %149 = arith.subf %129, %148 : vector<8x32xf32>
    %150 = arith.mulf %149, %149 : vector<8x32xf32>
    %cst_69 = arith.constant dense<0.000000e+00> : vector<32xf32>
    %151 = vector.multi_reduction <add>, %150, %cst_69 [0] : vector<8x32xf32> to vector<32xf32>
    %152 = vector.shape_cast %151 : vector<32xf32> to vector<1x32xf32>
    %cst_70 = arith.constant 7.000000e+00 : f32
    %153 = vector.broadcast %cst_70 : f32 to vector<1x32xf32>
    %154 = arith.divf %152, %153 : vector<1x32xf32>
    %155 = math.rsqrt %154 : vector<1x32xf32>
    %156 = vector.broadcast %155 : vector<1x32xf32> to vector<8x32xf32>
    %157 = arith.mulf %149, %156 : vector<8x32xf32>
    %cst_71 = arith.constant dense<0.000000e+00> : vector<32x32xf32>
    %158 = tpu.matmul %143, %157, %cst_71 {dimension_numbers = #tpu.dot_dimension_numbers<[0], [0], [1], [1], [0, 1, 1, 1], [], []>} : vector<8x32xf32>, vector<8x32xf32>, vector<32x32xf32> -> vector<32x32xf32>
    %cst_72 = arith.constant 1.250000e-01 : f32
    %159 = vector.broadcast %cst_72 : f32 to vector<32x32xf32>
    %160 = arith.mulf %158, %159 : vector<32x32xf32>
    %161 = tpu.iota {dimensions = array<i32: 0>} : vector<32x32xi32>
    %162 = tpu.iota {dimensions = array<i32: 1>} : vector<32x32xi32>
    %163 = arith.cmpi eq, %161, %162 : vector<32x32xi32>
    %164 = arith.extui %163 : vector<32x32xi1> to vector<32x32xi32>
    %165 = arith.sitofp %164 : vector<32x32xi32> to vector<32x32xf32>
    %166 = arith.subf %160, %165 : vector<32x32xf32>
    %167 = arith.mulf %166, %166 : vector<32x32xf32>
    %cst_73 = arith.constant 5.000000e-03 : f32
    %168 = vector.broadcast %cst_73 : f32 to vector<32x32xf32>
    %169 = arith.mulf %167, %168 : vector<32x32xf32>
    %170 = arith.select %163, %167, %169 : vector<32x32xi1>, vector<32x32xf32>
    %171 = vector.shape_cast %170 : vector<32x32xf32> to vector<1x32x32xf32>
    %cst_74 = arith.constant dense<0.000000e+00> : vector<1xf32>
    %172 = vector.multi_reduction <add>, %171, %cst_74 [1, 2] : vector<1x32x32xf32> to vector<1xf32>
    %173 = vector.shape_cast %172 : vector<1xf32> to vector<1x1x1xf32>
    %174 = vector.extract %173[0, 0, 0] : f32 from vector<1x1x1xf32>
    %175 = vector.broadcast %174 : f32 to vector<1x1xf32>
    %c0_75 = arith.constant 0 : index
    %c0_76 = arith.constant 0 : index
    %176 = vector.load %arg9[%c0_75, %c0_76] : memref<1x1xf32, #tpu.memory_space<vmem>>, vector<1x1xf32>
    tpu.vector_store %arg9[%c0_75, %c0_76], %175 {strides = array<i32>} : memref<1x1xf32, #tpu.memory_space<vmem>>, vector<1x1xf32>,
    return
  }
}

</mosaic_0001>

<bundles_post_ra>
// kernel: barlow_twins_forward.3
= control target key start
LH: loop header
LB: loop body
LE: loop exit
PB: predicated region body
PF: predicated region fallthrough
CT: control target
= control target key end

     0   :  { %s946_s0 = inlined_call_operand.vmem [shape: f32[16,128], index: 0, kind: input, shape index: {}]   ;;  %s947_s1 = inlined_call_operand.vmem [shape: bf16[128,64], index: 1, kind: input, shape index: {}]   ;;  %s948_s2 = inlined_call_operand.vmem [shape: f32[1,64], index: 2, kind: input, shape index: {}]   ;;  %s949_s3 = inlined_call_operand.vmem [shape: f32[1,64], index: 3, kind: input, shape index: {}]   ;;  %s950_s4 = inlined_call_operand.vmem [shape: bf16[64,64], index: 4, kind: input, shape index: {}]   ;;  %s951_s5 = inlined_call_operand.vmem [shape: f32[1,64], index: 5, kind: input, shape index: {}]   ;;  %s952_s6 = inlined_call_operand.vmem [shape: f32[1,64], index: 6, kind: input, shape index: {}]   ;;  %s953_s7 = inlined_call_operand.vmem [shape: bf16[64,32], index: 7, kind: input, shape index: {}]   ;;  %s954_s8 = inlined_call_operand.vmem [shape: f32[1,32], index: 8, kind: input, shape index: {}]   ;;  %s955_s9 = inlined_call_operand.hbm [shape: f32[1,1], index: 9, kind: output, shape index: {}]  }
   0x1   :  { %v717_v0 = vld [vmem:[%s947_s1 + $0x38] sm:$0xff]  ;;  %v716_v1 = vld [vmem:[%s947_s1 + $0x30] sm:$0xff] }
   0x2   :  { %100 = vmatpush.bf16.msra.mxu0 %v717_v0  ;;  %307 = vmatpush.bf16.msra.mxu3 %v717_v0 }
   0x3   :  { %14 = vsyncpa [#allocation3], 0  ;;  %v715_v2 = vld [vmem:[%s947_s1 + $0x28] sm:$0xff]  ;;  %v714_v3 = vld [vmem:[%s947_s1 + $0x20] sm:$0xff]  ;;  %v780_v12 = vmov 8.0   ;;  %vm115_vm0 = vcmask 523264  }
   0x4   :  { %v713_v4 = vld [vmem:[%s947_s1 + $0x18] sm:$0xff]  ;;  %v712_v5 = vld [vmem:[%s947_s1 + $0x10] sm:$0xff]  ;;  %v711_v6 = vld [vmem:[%s947_s1 + $0x8] sm:$0xff]  ;;  %738 = vrcp.f32 %v780_v12  ;;  %vm420_vm14 = vcmask 261120  }
   0x5   :  { %v710_v7 = vld [vmem:[%s947_s1] sm:$0xff]  ;;  %v305_v9 = vld [vmem:[%s946_s0 + $0x8] sm:$0xff]  ;;  %v721_v38 = vld [vmem:[%s950_s4 + $0x18] sm:$0xff] }
   0x6   :  { %101 = vmatpush.bf16.msra.mxu0 %v716_v1  ;;  %308 = vmatpush.bf16.msra.mxu3 %v716_v1  ;;  %v34_v8 = vld [vmem:[%s946_s0] sm:$0xff]  ;;  %v306_v11 = vpack.c.bf16 %v305_v9, %v305_v9  ;;  %v720_v43 = vld [vmem:[%s950_s4 + $0x10] sm:$0xff]  ;;  %v719_v48 = vld [vmem:[%s950_s4 + $0x8] sm:$0xff]  ;;  %s625_s0 = sshll.u32 %s955_s9, 4  ;;  %s626_s0 = int_to_ptr.hbm [resolvable:$true] %s625_s0 }
   0x7   :  { %v35_v10 = vpack.c.bf16 %v34_v8, %v34_v8  ;;  %202 = vmatpush.bf16.msra.mxu2 %v721_v38  ;;  %361 = vmatpush.bf16.msra.mxu1 %v721_v38  ;;  %v718_v53 = vld [vmem:[%s950_s4] sm:$0xff] }
   0xa   :  { %102 = vmatpush.bf16.msra.mxu0 %v715_v2  ;;  %309 = vmatpush.bf16.msra.mxu3 %v715_v2  ;;  %v739_v13 = vpop.eup %738 }
   0xb   :  { %v124_v14 = vmul.f32 8.0, %v739_v13  ;;  %vm128_vm1 = vweird.f32 %v739_v13  ;;  %203 = vmatpush.bf16.msra.mxu2 %v720_v43  ;;  %362 = vmatpush.bf16.msra.mxu1 %v720_v43 }
   0xd   :  { %v125_v15 = vsub.f32 1.0, %v124_v14  ;;  %v734_v14 = vld [vmem:[%s949_s3] ss:$0 sm:$0xff] }
   0xe   :  { %103 = vmatpush.bf16.msra.mxu0 %v714_v3  ;;  %310 = vmatpush.bf16.msra.mxu3 %v714_v3 }
   0xf   :  { %v126_v19 = vmul.f32 %v739_v13, %v125_v15  ;;  %204 = vmatpush.bf16.msra.mxu2 %v719_v48  ;;  %363 = vmatpush.bf16.msra.mxu1 %v719_v48 }
  0x11   :  { %v127_v23 = vadd.f32 %v739_v13, %v126_v19 }
  0x12   :  { %104 = vmatpush.bf16.msra.mxu0 %v713_v4  ;;  %311 = vmatpush.bf16.msra.mxu3 %v713_v4 }
  0x13   :  { %v866_v30 = vsel %vm128_vm1, %v739_v13, %v127_v23  ;;  %205 = vmatpush.bf16.msra.mxu2 %v718_v53  ;;  %364 = vmatpush.bf16.msra.mxu1 %v718_v53 }
  0x16   :  { %105 = vmatpush.bf16.msra.mxu0 %v712_v5  ;;  %312 = vmatpush.bf16.msra.mxu3 %v712_v5 }
  0x1a   :  { %106 = vmatpush.bf16.msra.mxu0 %v711_v6  ;;  %313 = vmatpush.bf16.msra.mxu3 %v711_v6 }
  0x1e   :  { %107 = vmatpush.bf16.msra.mxu0 %v710_v7  ;;  %314 = vmatpush.bf16.msra.mxu3 %v710_v7 }
  0x21   :  { %108 = vmatmul.bf16.vlgmr.msra.gmra.mxu0 %v35_v10  ;;  %315 = vmatmul.bf16.vlgmr.msra.gmra.mxu3 %v306_v11  ;;  %v733_v10 = vld [vmem:[%s948_s2] ss:$0 sm:$0xff] }
  0x9e   :  { %v109_v16 = vpop.f32.mrf.mxu0 }
  0x9f   :  { %v116_v17 = vsel %vm115_vm0, %v109_v16, 0.0 }
  0xa0   :  { %v117_v18 = vrot.slane %v116_v17, 4 }
  0xa2   :  { %v118_v20 = vadd.f32 %v117_v18, %v116_v17 }
  0xa4   :  { %v119_v21 = vrot.slane %v118_v20, 2  ;;  %v316_v22 = vpop.f32.mrf.mxu3 }
  0xa5   :  { %v320_v24 = vsel %vm115_vm0, %v316_v22, 0.0 }
  0xa6   :  { %v120_v25 = vadd.f32 %v119_v21, %v118_v20  ;;  %v111_v26 = vpop.f32.mrf.mxu0  ;;  %v321_v27 = vrot.slane %v320_v24, 4 }
  0xa8   :  { %v121_v28 = vrot.slane %v120_v25, 1  ;;  %v322_v29 = vadd.f32 %v321_v27, %v320_v24 }
  0xaa   :  { %v122_v31 = vadd.f32 %v121_v28, %v120_v25  ;;  %v323_v32 = vrot.slane %v322_v29, 2 }
  0xac   :  { %v130_v33 = vmul.f32 %v866_v30, %v122_v31  ;;  %v324_v34 = vadd.f32 %v323_v32, %v322_v29  ;;  %v318_v35 = vpop.f32.mrf.mxu3 }
  0xae   :  { %v131_v36 = vsub.f32 %v109_v16, %v130_v33  ;;  %v325_v37 = vrot.slane %v324_v34, 1 }
  0xb0   :  { %v132_v39 = vmul.f32 %v131_v36, %v131_v36  ;;  %v326_v40 = vadd.f32 %v325_v37, %v324_v34 }
  0xb2   :  { %v133_v41 = vsel %vm115_vm0, %v132_v39, 0.0  ;;  %v327_v42 = vmul.f32 %v326_v40, %v866_v30 }
  0xb3   :  { %v134_v44 = vrot.slane %v133_v41, 4 }
  0xb4   :  { %v328_v45 = vsub.f32 %v316_v22, %v327_v42 }
  0xb5   :  { %v135_v46 = vadd.f32 %v134_v44, %v133_v41 }
  0xb6   :  { %v329_v47 = vmul.f32 %v328_v45, %v328_v45 }
  0xb7   :  { %v136_v49 = vrot.slane %v135_v46, 2 }
  0xb8   :  { %v330_v50 = vsel %vm115_vm0, %v329_v47, 0.0 }
  0xb9   :  { %v137_v51 = vadd.f32 %v136_v49, %v135_v46  ;;  %v331_v52 = vrot.slane %v330_v50, 4 }
  0xbb   :  { %v138_v54 = vrot.slane %v137_v51, 1  ;;  %v332_v55 = vadd.f32 %v331_v52, %v330_v50  ;;  %v725_v50 = vld [vmem:[%s953_s7 + $0x18] sm:$0xff] }
  0xbc   :  { %296 = vmatpush.bf16.msrb.mxu2 %v725_v50 }
  0xbd   :  { %v139_v56 = vadd.f32 %v138_v54, %v137_v51  ;;  %v333_v57 = vrot.slane %v332_v55, 2 }
  0xbf   :  { %v140_v58 = vmul.f32 %v139_v56, %v866_v30  ;;  %v334_v59 = vadd.f32 %v333_v57, %v332_v55  ;;  %v724_v55 = vld [vmem:[%s953_s7 + $0x10] sm:$0xff] }
  0xc0   :  { %297 = vmatpush.bf16.msrb.mxu2 %v724_v55 }
  0xc1   :  { %v141_v60 = vadd.f32 1e-05, %v140_v58  ;;  %v335_v61 = vrot.slane %v334_v59, 1 }
  0xc3   :  { %740 = vrsqrt.f32 %v141_v60  ;;  %v336_v62 = vadd.f32 %v335_v61, %v334_v59  ;;  %vm148_vm3 = vweird.f32 %v141_v60 }
  0xc5   :  { %v337_v63 = vmul.f32 %v336_v62, %v866_v30 }
  0xc7   :  { %v338_v0 = vadd.f32 1e-05, %v337_v63 }
  0xc9   :  { %v741_v1 = vpop.eup %740  ;;  %742 = vrsqrt.f32 %v338_v0  ;;  %vm345_vm5 = vweird.f32 %v338_v0 }
  0xca   :  { %v143_v2 = vmul.f32 %v741_v1, %v141_v60  ;;  %vm149_vm2 = vweird.f32 %v741_v1  ;;  %v723_v60 = vld [vmem:[%s953_s7 + $0x8] sm:$0xff] }
  0xcb   :  { %vm150_vm4 = vmor %vm148_vm3, %vm149_vm2  ;;  %298 = vmatpush.bf16.msrb.mxu2 %v723_v60 }
  0xcc   :  { %v144_v3 = vmul.f32 %v741_v1, %v143_v2 }
  0xce   :  { %v145_v4 = vmul.f32 0.5, %v144_v3 }
  0xcf   :  { %v743_v5 = vpop.eup %742 }
  0xd0   :  { %v146_v6 = vsub.f32 1.5, %v145_v4  ;;  %v340_v7 = vmul.f32 %v743_v5, %v338_v0  ;;  %vm346_vm6 = vweird.f32 %v743_v5 }
  0xd1   :  { %vm347_vm7 = vmor %vm345_vm5, %vm346_vm6  ;;  %vm518_vm6 = vcmask 64512  }
  0xd2   :  { %v147_v8 = vmul.f32 %v741_v1, %v146_v6  ;;  %v341_v9 = vmul.f32 %v743_v5, %v340_v7 }
  0xd4   :  { %v151_v11 = vsel %vm150_vm4, %v741_v1, %v147_v8  ;;  %v342_v12 = vmul.f32 0.5, %v341_v9  ;;  %v722_v1 = vld [vmem:[%s953_s7] sm:$0xff] }
  0xd5   :  { %v152_v13 = vmul.f32 %v151_v11, %v131_v36  ;;  %299 = vmatpush.bf16.msrb.mxu2 %v722_v1 }
  0xd6   :  { %v343_v15 = vsub.f32 1.5, %v342_v12 }
  0xd7   :  { %v156_v16 = vmul.f32 %v733_v10, %v152_v13 }
  0xd8   :  { %v344_v17 = vmul.f32 %v743_v5, %v343_v15 }
  0xd9   :  { %v160_v18 = vadd.f32 %v734_v14, %v156_v16 }
  0xda   :  { %v348_v19 = vsel %vm347_vm7, %v743_v5, %v344_v17 }
  0xdb   :  { %v349_v20 = vmul.f32 %v348_v19, %v328_v45  ;;  %v161_v21 = vmax.f32 %v160_v18, 0.0 }
  0xdd   :  { %v350_v22 = vmul.f32 %v733_v10, %v349_v20  ;;  %v162_v23 = vpack.c.bf16 %v161_v21, %v161_v21  ;;  %v735_v21 = vld [vmem:[%s951_s5] ss:$0 sm:$0xff] }
  0xdf   :  { %682 = vmatmul.msk.bf16.vlgmr.msra.gmra.mxu2 %vm115_vm0, %v162_v23  ;;  %v351_v24 = vadd.f32 %v734_v14, %v350_v22 }
  0xe0   :  { %411 = vmatpush.bf16.msra.mxu2 %v725_v50 }
  0xe1   :  { %v352_v25 = vmax.f32 %v351_v24, 0.0 }
  0xe3   :  { %v353_v26 = vpack.c.bf16 %v352_v25, %v352_v25  ;;  %v736_v25 = vld [vmem:[%s952_s6] ss:$0 sm:$0xff]  ;;  %s783_s6 = smov [#allocation2]  }
  0xe4   :  { %412 = vmatpush.bf16.msra.mxu2 %v724_v55 }
  0xe5   :  { %700 = vmatmul.msk.bf16.vlgmr.msra.gmra.mxu1 %vm115_vm0, %v353_v26 }
  0xe8   :  { %413 = vmatpush.bf16.msra.mxu2 %v723_v60 }
  0xec   :  { %414 = vmatpush.bf16.msra.mxu2 %v722_v1 }
 0x162   :  { %v207_v27 = vpop.f32.mrf.mxu2  ;;  %v366_v28 = vpop.f32.mrf.mxu1 }
 0x163   :  { %v213_v29 = vsel %vm115_vm0, %v207_v27, 0.0  ;;  %v370_v31 = vsel %vm115_vm0, %v366_v28, 0.0 }
 0x164   :  { %v214_v32 = vrot.slane %v213_v29, 4  ;;  %v371_v33 = vrot.slane %v370_v31, 4 }
 0x166   :  { %v215_v34 = vadd.f32 %v214_v32, %v213_v29  ;;  %v372_v35 = vadd.f32 %v371_v33, %v370_v31 }
 0x168   :  { %v216_v36 = vrot.slane %v215_v34, 2  ;;  %v373_v37 = vrot.slane %v372_v35, 2 }
 0x16a   :  { %v217_v38 = vadd.f32 %v216_v36, %v215_v34  ;;  %v209_v39 = vpop.f32.mrf.mxu2  ;;  %v374_v40 = vadd.f32 %v373_v37, %v372_v35  ;;  %v368_v41 = vpop.f32.mrf.mxu1  ;;  %v737_v37 = vld [vmem:[%s954_s8] ss:$0 sm:$0xff]  ;;  %s623_s8 = sshll.u32 %s783_s6, 4  ;;  %s624_s8 = int_to_ptr.vmem [resolvable:$true] %s623_s8 }
 0x16c   :  { %v218_v42 = vrot.slane %v217_v38, 1  ;;  %v375_v43 = vrot.slane %v374_v40, 1 }
 0x16e   :  { %v219_v44 = vadd.f32 %v218_v42, %v217_v38  ;;  %v376_v45 = vadd.f32 %v375_v43, %v374_v40  ;;  %v781_v43 = vmov 7.0  }
 0x170   :  { %v220_v46 = vmul.f32 %v219_v44, %v866_v30  ;;  %v377_v47 = vmul.f32 %v376_v45, %v866_v30 }
 0x172   :  { %v221_v48 = vsub.f32 %v207_v27, %v220_v46  ;;  %v378_v49 = vsub.f32 %v366_v28, %v377_v47 }
 0x174   :  { %v222_v51 = vmul.f32 %v221_v48, %v221_v48  ;;  %v379_v52 = vmul.f32 %v378_v49, %v378_v49 }
 0x176   :  { %v223_v53 = vsel %vm115_vm0, %v222_v51, 0.0  ;;  %v380_v54 = vsel %vm115_vm0, %v379_v52, 0.0 }
 0x177   :  { %v224_v56 = vrot.slane %v223_v53, 4  ;;  %v381_v57 = vrot.slane %v380_v54, 4 }
 0x179   :  { %v225_v58 = vadd.f32 %v224_v56, %v223_v53  ;;  %v382_v59 = vadd.f32 %v381_v57, %v380_v54 }
 0x17b   :  { %v226_v61 = vrot.slane %v225_v58, 2  ;;  %v383_v62 = vrot.slane %v382_v59, 2 }
 0x17d   :  { %v227_v63 = vadd.f32 %v226_v61, %v225_v58  ;;  %v384_v0 = vadd.f32 %v383_v62, %v382_v59 }
 0x17f   :  { %v228_v2 = vrot.slane %v227_v63, 1  ;;  %v385_v3 = vrot.slane %v384_v0, 1 }
 0x181   :  { %v229_v4 = vadd.f32 %v228_v2, %v227_v63  ;;  %v386_v5 = vadd.f32 %v385_v3, %v384_v0 }
 0x183   :  { %v230_v6 = vmul.f32 %v229_v4, %v866_v30  ;;  %v387_v7 = vmul.f32 %v386_v5, %v866_v30 }
 0x185   :  { %v231_v8 = vadd.f32 1e-05, %v230_v6  ;;  %v388_v9 = vadd.f32 1e-05, %v387_v7 }
 0x187   :  { %744 = vrsqrt.f32 %v231_v8  ;;  %vm238_vm9 = vweird.f32 %v231_v8  ;;  %vm395_vm10 = vweird.f32 %v388_v9 }
 0x188   :  { %746 = vrsqrt.f32 %v388_v9 }
 0x189   :  { %748 = vrcp.f32 %v781_v43  ;;  %v564_v43 = vlaneseq }
 0x18d   :  { %v745_v10 = vpop.eup %744 }
 0x18e   :  { %v747_v11 = vpop.eup %746  ;;  %v233_v12 = vmul.f32 %v745_v10, %v231_v8  ;;  %vm239_vm8 = vweird.f32 %v745_v10 }
 0x18f   :  { %v390_v13 = vmul.f32 %v747_v11, %v388_v9  ;;  %vm396_vm11 = vweird.f32 %v747_v11  ;;  %vm240_vm12 = vmor %vm238_vm9, %vm239_vm8 }
 0x190   :  { %v234_v14 = vmul.f32 %v745_v10, %v233_v12  ;;  %vm397_vm13 = vmor %vm395_vm10, %vm396_vm11  ;;  %vm616_vm11 = vcmask 0  }
 0x191   :  { %v391_v15 = vmul.f32 %v747_v11, %v390_v13 }
 0x192   :  { %v235_v16 = vmul.f32 0.5, %v234_v14 }
 0x193   :  { %v392_v17 = vmul.f32 0.5, %v391_v15 }
 0x194   :  { %v236_v18 = vsub.f32 1.5, %v235_v16 }
 0x195   :  { %v393_v19 = vsub.f32 1.5, %v392_v17 }
 0x196   :  { %v237_v20 = vmul.f32 %v745_v10, %v236_v18 }
 0x197   :  { %v394_v23 = vmul.f32 %v747_v11, %v393_v19 }
 0x198   :  { %v241_v22 = vsel %vm240_vm12, %v745_v10, %v237_v20 }
 0x199   :  { %v242_v24 = vmul.f32 %v241_v22, %v221_v48  ;;  %v398_v27 = vsel %vm397_vm13, %v747_v11, %v394_v23  ;;  %v749_v48 = vpop.eup %748 }
 0x19a   :  { %v399_v29 = vmul.f32 %v398_v27, %v378_v49  ;;  %v439_v52 = vmul.f32 7.0, %v749_v48  ;;  %vm443_vm15 = vweird.f32 %v749_v48 }
 0x19b   :  { %v246_v26 = vmul.f32 %v735_v21, %v242_v24 }
 0x19c   :  { %v400_v33 = vmul.f32 %v735_v21, %v399_v29  ;;  %v440_v58 = vsub.f32 1.0, %v439_v52 }
 0x19d   :  { %v250_v28 = vadd.f32 %v736_v25, %v246_v26 }
 0x19e   :  { %v401_v34 = vadd.f32 %v736_v25, %v400_v33  ;;  %v441_v0 = vmul.f32 %v749_v48, %v440_v58 }
 0x19f   :  { %v251_v31 = vmax.f32 %v250_v28, 0.0 }
 0x1a0   :  { %v402_v35 = vmax.f32 %v401_v34, 0.0  ;;  %v442_v5 = vadd.f32 %v749_v48, %v441_v0 }
 0x1a1   :  { %v252_v32 = vpack.c.bf16 %v251_v31, %v251_v31 }
 0x1a2   :  { %v403_v36 = vpack.c.bf16 %v402_v35, %v402_v35  ;;  %v444_v10 = vsel %vm443_vm15, %v749_v48, %v442_v5 }
 0x1a3   :  { %699 = vmatmul.msk.bf16.vlgmr.msrb.gmra.mxu2 %vm115_vm0, %v252_v32 }
 0x1b3   :  { %701 = vmatmul.msk.bf16.vlgmr.msra.gmra.mxu2 %vm115_vm0, %v403_v36 }
 0x226   :  { %v301_v38 = vpop.f32.mrf.mxu2 }
 0x227   :  { %v302_v39 = vadd.f32 %v737_v37, %v301_v38 }
 0x229   :  { %v421_v40 = vsel %vm420_vm14, %v302_v39, 0.0 }
 0x22a   :  { %v422_v41 = vrot.slane %v421_v40, 4 }
 0x22c   :  { %v423_v42 = vadd.f32 %v422_v41, %v421_v40 }
 0x22e   :  { %v424_v44 = vrot.slane %v423_v42, 2  ;;  %v303_v45 = vpop.f32.mrf.mxu2 }
 0x230   :  { %v425_v46 = vadd.f32 %v424_v44, %v423_v42  ;;  %v565_v44 = vshrl.u32 %v564_v43, 7 }
 0x232   :  { %v426_v47 = vrot.slane %v425_v46, 1  ;;  %v566_v45 = vadd.s32 8, %v565_v44 }
 0x234   :  { %v427_v49 = vadd.f32 %v426_v47, %v425_v46  ;;  %v570_v46 = vand.u32 127, %v564_v43 }
 0x236   :  { %v416_v50 = vpop.f32.mrf.mxu2  ;;  %v428_v51 = vmul.f32 %v427_v49, %v866_v30  ;;  %vm572_vm7 = vcmp.eq.s32.totalorder %v566_v45, %v570_v46  ;;  %vm571_vm8 = vcmp.eq.s32.totalorder %v565_v44, %v570_v46 }
 0x237   :  { %v417_v53 = vadd.f32 %v737_v37, %v416_v50  ;;  %v567_v50 = vadd.s32 16, %v565_v44 }
 0x238   :  { %v429_v54 = vsub.f32 %v302_v39, %v428_v51  ;;  %v782_v51 = vmov 0.0  }
 0x239   :  { %v457_v55 = vsel %vm420_vm14, %v417_v53, 0.0  ;;  %v707_v52 = vsel %vm572_vm7, 1.0, %v782_v51  ;;  %vm573_vm9 = vcmp.eq.s32.totalorder %v567_v50, %v570_v46 }
 0x23a   :  { %v458_v56 = vrot.slane %v457_v55, 4  ;;  %v430_v57 = vmul.f32 %v429_v54, %v429_v54  ;;  %v708_v58 = vsel %vm573_vm9, 1.0, %v782_v51 }
 0x23c   :  { %v459_v59 = vadd.f32 %v458_v56, %v457_v55  ;;  %v431_v60 = vsel %vm420_vm14, %v430_v57, 0.0 }
 0x23d   :  { %v432_v61 = vrot.slane %v431_v60, 4 }
 0x23e   :  { %v460_v62 = vrot.slane %v459_v59, 2  ;;  %v418_v63 = vpop.f32.mrf.mxu2 }
 0x23f   :  { %v433_v1 = vadd.f32 %v432_v61, %v431_v60  ;;  %v568_v61 = vadd.s32 24, %v565_v44 }
 0x240   :  { %v461_v2 = vadd.f32 %v460_v62, %v459_v59 }
 0x241   :  { %v434_v3 = vrot.slane %v433_v1, 2  ;;  %vm574_vm10 = vcmp.eq.s32.totalorder %v568_v61, %v570_v46 }
 0x242   :  { %v462_v4 = vrot.slane %v461_v2, 1  ;;  %v709_v5 = vsel %vm574_vm10, 1.0, %v782_v51 }
 0x243   :  { %v435_v6 = vadd.f32 %v434_v3, %v433_v1 }
 0x244   :  { %v463_v7 = vadd.f32 %v462_v4, %v461_v2 }
 0x245   :  { %v436_v8 = vrot.slane %v435_v6, 1 }
 0x246   :  { %v464_v9 = vmul.f32 %v463_v7, %v866_v30 }
 0x247   :  { %v437_v11 = vadd.f32 %v436_v8, %v435_v6 }
 0x248   :  { %v465_v12 = vsub.f32 %v417_v53, %v464_v9 }
 0x249   :  { %v445_v13 = vmul.f32 %v444_v10, %v437_v11 }
 0x24a   :  { %v466_v14 = vmul.f32 %v465_v12, %v465_v12 }
 0x24b   :  { %750 = vrsqrt.f32 %v445_v13  ;;  %vm452_vm1 = vweird.f32 %v445_v13 }
 0x24c   :  { %v467_v15 = vsel %vm420_vm14, %v466_v14, 0.0 }
 0x24d   :  { %v468_v16 = vrot.slane %v467_v15, 4 }
 0x24f   :  { %v469_v17 = vadd.f32 %v468_v16, %v467_v15 }
 0x251   :  { %v751_v18 = vpop.eup %750  ;;  %v470_v19 = vrot.slane %v469_v17, 2 }
 0x252   :  { %v447_v20 = vmul.f32 %v751_v18, %v445_v13  ;;  %vm453_vm0 = vweird.f32 %v751_v18 }
 0x253   :  { %v471_v21 = vadd.f32 %v470_v19, %v469_v17  ;;  %vm454_vm2 = vmor %vm452_vm1, %vm453_vm0 }
 0x254   :  { %v448_v22 = vmul.f32 %v751_v18, %v447_v20 }
 0x255   :  { %v472_v23 = vrot.slane %v471_v21, 1 }
 0x256   :  { %v449_v24 = vmul.f32 0.5, %v448_v22 }
 0x257   :  { %v473_v25 = vadd.f32 %v472_v23, %v471_v21 }
 0x258   :  { %v450_v26 = vsub.f32 1.5, %v449_v24 }
 0x259   :  { %v474_v30 = vmul.f32 %v473_v25, %v444_v10 }
 0x25a   :  { %v451_v27 = vmul.f32 %v751_v18, %v450_v26 }
 0x25b   :  { %752 = vrsqrt.f32 %v474_v30  ;;  %vm481_vm3 = vweird.f32 %v474_v30 }
 0x25c   :  { %v455_v28 = vsel %vm454_vm2, %v751_v18, %v451_v27 }
 0x25d   :  { %v456_v29 = vmul.f32 %v455_v28, %v429_v54  ;;  %v706_v54 = vsel %vm571_vm8, 1.0, %v782_v51 }
 0x25f   :  { %486 = vxpose.xlu0.b32.start.end [1/1] (short) (narrow) %v456_v29, 32 }
 0x261   :  { %v753_v31 = vpop.eup %752 }
 0x262   :  { %v476_v32 = vmul.f32 %v753_v31, %v474_v30  ;;  %vm482_vm4 = vweird.f32 %v753_v31 }
 0x263   :  { %vm483_vm5 = vmor %vm481_vm3, %vm482_vm4 }
 0x264   :  { %v477_v33 = vmul.f32 %v753_v31, %v476_v32 }
 0x266   :  { %v478_v34 = vmul.f32 0.5, %v477_v33 }
 0x268   :  { %v479_v35 = vsub.f32 1.5, %v478_v34 }
 0x26a   :  { %v480_v36 = vmul.f32 %v753_v31, %v479_v35 }
 0x26c   :  { %v484_v37 = vsel %vm483_vm5, %v753_v31, %v480_v36 }
 0x26d   :  { %v485_v38 = vmul.f32 %v484_v37, %v465_v12 }
 0x26f   :  { %546 = vmatpush.msrb.mxu0 %v485_v38  ;;  %726 = vmatpush.msrb.mxu1 %v485_v38 }
 0x303   :  { %v502_v39 = vpop.trf.xlu0 }
 0x304   :  { %702 = vmatmul.msk.f32.vlgmr.msrb.gmra.mxu0 %vm518_vm6, %v502_v39 }
 0x30b   :  { %v503_v40 = vpop.trf.xlu0 }
 0x30c   :  { %703 = vmatmul.msk.f32.vlgmr.msrb.gmra.mxu1 %vm518_vm6, %v503_v40 }
 0x313   :  { %v504_v41 = vpop.trf.xlu0 }
 0x314   :  { %704 = vmatmul.msk.f32.gmra.mxu1 %vm518_vm6, %v504_v41 }
 0x31b   :  { %v505_v42 = vpop.trf.xlu0 }
 0x31c   :  { %705 = vmatmul.msk.f32.gmra.mxu1 %vm518_vm6, %v505_v42 }
 0x381   :  { %v548_v47 = vpop.f32.mrf.mxu0 }
 0x382   :  { %v560_v53 = vmul.f32 0.125, %v548_v47 }
 0x384   :  { %v583_v56 = vsub.f32 %v560_v53, %v706_v54 }
 0x386   :  { %v587_v62 = vmul.f32 %v583_v56, %v583_v56 }
 0x388   :  { %v591_v2 = vmul.f32 0.005, %v587_v62 }
 0x389   :  { %v551_v48 = vpop.f32.mrf.mxu1 }
 0x38a   :  { %v561_v49 = vmul.f32 0.125, %v551_v48  ;;  %v595_v8 = vsel %vm571_vm8, %v587_v62, %v591_v2 }
 0x38b   :  { %v599_v13 = vsel %vm420_vm14, %v595_v8, 0.0 }
 0x38c   :  { %v584_v55 = vsub.f32 %v561_v49, %v707_v52 }
 0x38e   :  { %v588_v59 = vmul.f32 %v584_v55, %v584_v55 }
 0x390   :  { %v592_v0 = vmul.f32 0.005, %v588_v59 }
 0x391   :  { %v554_v57 = vpop.f32.mrf.mxu1 }
 0x392   :  { %v562_v60 = vmul.f32 0.125, %v554_v57  ;;  %v596_v6 = vsel %vm572_vm7, %v588_v59, %v592_v0 }
 0x393   :  { %v600_v11 = vsel %vm420_vm14, %v596_v6, 0.0 }
 0x394   :  { %v585_v63 = vsub.f32 %v562_v60, %v708_v58  ;;  %v601_v16 = vadd.f32 %v600_v11, %v599_v13 }
 0x396   :  { %v589_v1 = vmul.f32 %v585_v63, %v585_v63 }
 0x398   :  { %v593_v3 = vmul.f32 0.005, %v589_v1 }
 0x399   :  { %v557_v4 = vpop.f32.mrf.mxu1 }
 0x39a   :  { %v563_v7 = vmul.f32 0.125, %v557_v4  ;;  %v597_v10 = vsel %vm573_vm9, %v589_v1, %v593_v3 }
 0x39b   :  { %v602_v14 = vsel %vm420_vm14, %v597_v10, 0.0 }
 0x39c   :  { %v586_v9 = vsub.f32 %v563_v7, %v709_v5  ;;  %v603_v18 = vadd.f32 %v602_v14, %v601_v16 }
 0x39e   :  { %v590_v12 = vmul.f32 %v586_v9, %v586_v9 }
 0x3a0   :  { %v594_v15 = vmul.f32 0.005, %v590_v12 }
 0x3a2   :  { %v598_v17 = vsel %vm574_vm10, %v590_v12, %v594_v15 }
 0x3a3   :  { %v604_v19 = vsel %vm420_vm14, %v598_v17, 0.0 }
 0x3a4   :  { %v605_v20 = vadd.f32 %v604_v19, %v603_v18 }
 0x3a6   :  { %606 = vadd.xlane.f32.xlu0 %v605_v20 }
 0x419   :  { %v607_v21 = vpop.xlane.xlu0 %606 }
 0x41a   :  { %v608_v22 = vrot.slane %v607_v21, 4 }
 0x41c   :  { %v609_v23 = vadd.f32 %v608_v22, %v607_v21 }
 0x41e   :  { %v610_v24 = vrot.slane %v609_v23, 2 }
 0x420   :  { %v611_v25 = vadd.f32 %v610_v24, %v609_v23 }
 0x422   :  { %v612_v26 = vrot.slane %v611_v25, 1 }
 0x424   :  { %v613_v30 = vadd.f32 %v612_v26, %v611_v25 }
 0x426   :  { %727 = vpush %v613_v30 }
 0x457   :  { %s728_s1 = spop %727 }
 0x458   :  { %v615_v27 = vstv %s728_s1 }
 0x459   :  { %617 = vst.msk [vmem:[#allocation2] sm:$0x1] %vm616_vm11, %v615_v27 }
 0x45a   :  { %628 = dma.vmem_to_hbm [thread:$0]  %s624_s8, 16, %s626_s0, [#allocation3]  }
 0x45b   :  { %778 = dma.done.wait [#allocation3], 16  }
 0x45c   :  { %779 = vsyncadd [#allocation3], 4294967280 }
 0x45d   :  { %633 = vsyncpa [#allocation3], 1 }

// kernel: barlow_twins_forward.2
= control target key start
LH: loop header
LB: loop body
LE: loop exit
PB: predicated region body
PF: predicated region fallthrough
CT: control target
= control target key end

     0   :  { %s3666_s12 = smov 0   ;;  %s4530_s0 = inlined_call_operand.vmem [shape: bf16[4096,27], index: 0, kind: input, shape index: {}]   ;;  %s4531_s1 = inlined_call_operand.vmem [shape: bf16[27,128], index: 1, kind: input, shape index: {}]   ;;  %s4532_s2 = inlined_call_operand.vmem [shape: bf16[8,2048], index: 2, kind: input, shape index: {}]   ;;  %s4533_s3 = inlined_call_operand.vmem [shape: f32[16,128], index: 3, kind: output, shape index: {}]  }
   0x1 LB: > { %s3672_s13 = sadd.s32 4294967295, %s3643_s12   ;;  %p2838_p0 = scmp.ge.s32.totalorder %s3643_s12, 1  ;;  %s3643_s12 = sphi %s3666_s12, %s13_s12  }
   0x2   : > { %p138_p1 = scmp.lt.s32.totalorder %s3643_s12, 3 }
   0x4   : > { %p139_p2 = pnand %p2838_p0, %p138_p1 }
   0x6   : > { %142 = sbr.rel (%p139_p2) target bundleno = 1053 (0x41d), region = 32 }
   0xb   : > { %v3360_v0 = vld [vmem:[%s4531_s1 + $0x8] sm:$0xf]  ;;  %v3621_v1 = vld [vmem:[%s4531_s1 + $0x8] sm:$0x30]  ;;  %vm1468_vm0 = vcmask 1044480   ;;  %vm1469_vm1 = vcmask 1045504  }
   0xc   : > { %v3361_v2 = vor.u32 %v3621_v1, %v3360_v0  ;;  %s2839_s18 = sshll.u32 %s3672_s13, 8  ;;  %v3645_v3 = vmov 65535   ;;  %v3620_v7 = vld [vmem:[%s4531_s1] sm:$0xff]  ;;  %vm1083_vm2 = vcmask 220160   ;;  %p167_p4 = scmp.lt.s32.totalorder %s3672_s13, 1 }
   0xd   : > { %v1470_v4 = vsel %vm1468_vm0, 4294967295, %v3645_v3  ;;  %p162_p3 = scmp.lt.s32.totalorder %s2839_s18, 511 }
   0xe   : > { %v1471_v5 = vsel %vm1469_vm1, %v1470_v4, 0  ;;  %s4679_s13 = smov (!%p167_p4, %s3672_s13), 1 }
   0xf   : > { %v1473_v6 = vand.u32 %v3361_v2, %v1471_v5  ;;  %s4677_s18 = smov (!%p162_p3, %s2839_s18), 511  ;;  %s2841_s16 = sshll.u32 %s4679_s13, 3 }
  0x10   : > { %s2840_s21 = sshll.u32 %s4677_s18, 2  ;;  %s170_s19 = scalar_lea.vmem %s4533_s3, %s2841_s16 }
  0x11   : > { %1481 = vmatpush.bf16.msra.mxu0 %v1473_v6  ;;  %3624 = vmatpush.bf16.msra.mxu3 %v1473_v6  ;;  %s3689_s24 = scalar_lea.vmem %s4530_s0, %s2840_s21 }
  0x12   : > { %3623 = vmatpush.bf16.msra.mxu2 %v1473_v6  ;;  %3622 = vmatpush.bf16.msra.mxu1 %v1473_v6  ;;  %v3492_v8 = vld [vmem:[%s3689_s24] sm:$0xff]  ;;  %v3558_v9 = vld [vmem:[%s3689_s24 + $0x210] sm:$0xff]  ;;  %v3493_v10 = vld [vmem:[%s3689_s24 + $0x8] sm:$0xff] }
  0x13   : > { %v3559_v11 = vld [vmem:[%s3689_s24 + $0x218] sm:$0xff]  ;;  %v3494_v12 = vld [vmem:[%s3689_s24 + $0x10] sm:$0xff]  ;;  %v3560_v13 = vld [vmem:[%s3689_s24 + $0x220] sm:$0xff] }
  0x14   : > { %v3589_v14 = vld [vmem:[%s3689_s24 + $0x308] sm:$0xff]  ;;  %v3532_v15 = vld [vmem:[%s3689_s24 + $0x140] sm:$0xff]  ;;  %v3495_v16 = vld [vmem:[%s3689_s24 + $0x18] sm:$0xff] }
  0x15   : > { %1482 = vmatpush.bf16.msra.mxu0 %v3620_v7  ;;  %3627 = vmatpush.bf16.msra.mxu3 %v3620_v7  ;;  %v3561_v17 = vld [vmem:[%s3689_s24 + $0x228] sm:$0xff]  ;;  %v3590_v18 = vld [vmem:[%s3689_s24 + $0x310] sm:$0xff]  ;;  %v3496_v20 = vld [vmem:[%s3689_s24 + $0x20] sm:$0xff] }
  0x16   : > { %3626 = vmatpush.bf16.msra.mxu2 %v3620_v7  ;;  %3625 = vmatpush.bf16.msra.mxu1 %v3620_v7  ;;  %v3533_v19 = vld [vmem:[%s3689_s24 + $0x148] sm:$0xff]  ;;  %v3562_v21 = vld [vmem:[%s3689_s24 + $0x230] sm:$0xff]  ;;  %v3591_v22 = vld [vmem:[%s3689_s24 + $0x318] sm:$0xff] }
  0x17   : > { %v3534_v23 = vld [vmem:[%s3689_s24 + $0x150] sm:$0xff]  ;;  %v3497_v24 = vld [vmem:[%s3689_s24 + $0x28] sm:$0xff]  ;;  %v3563_v25 = vld [vmem:[%s3689_s24 + $0x238] sm:$0xff] }
  0x18   : > { %3362 = vmatmul.msk.bf16.vlgmr.msra.gmra.mxu0 %vm1083_vm2, %v3492_v8  ;;  %3459 = vmatmul.msk.bf16.vlgmr.msra.gmra.mxu3 %vm1083_vm2, %v3589_v14  ;;  %v3592_v26 = vld [vmem:[%s3689_s24 + $0x320] sm:$0xff]  ;;  %v3535_v27 = vld [vmem:[%s3689_s24 + $0x158] sm:$0xff]  ;;  %v3498_v28 = vld [vmem:[%s3689_s24 + $0x30] sm:$0xff] }
  0x19   : > { %3428 = vmatmul.msk.bf16.vlgmr.msra.gmra.mxu2 %vm1083_vm2, %v3558_v9  ;;  %3402 = vmatmul.msk.bf16.vlgmr.msra.gmra.mxu1 %vm1083_vm2, %v3532_v15  ;;  %v3564_v29 = vld [vmem:[%s3689_s24 + $0x240] sm:$0xff]  ;;  %v3593_v30 = vld [vmem:[%s3689_s24 + $0x328] sm:$0xff]  ;;  %v3499_v32 = vld [vmem:[%s3689_s24 + $0x38] sm:$0xff] }
  0x1a   : > { %v3536_v31 = vld [vmem:[%s3689_s24 + $0x160] sm:$0xff]  ;;  %v3565_v33 = vld [vmem:[%s3689_s24 + $0x248] sm:$0xff]  ;;  %v3594_v34 = vld [vmem:[%s3689_s24 + $0x330] sm:$0xff] }
  0x1b   : > { %v3537_v35 = vld [vmem:[%s3689_s24 + $0x168] sm:$0xff]  ;;  %v3500_v36 = vld [vmem:[%s3689_s24 + $0x40] sm:$0xff]  ;;  %v3566_v38 = vld [vmem:[%s3689_s24 + $0x250] sm:$0xff] }
  0x1c   : > { %v3595_v39 = vld [vmem:[%s3689_s24 + $0x338] sm:$0xff]  ;;  %v3538_v40 = vld [vmem:[%s3689_s24 + $0x170] sm:$0xff]  ;;  %v3501_v46 = vld [vmem:[%s3689_s24 + $0x48] sm:$0xff] }
  0x1d   : > { %v3567_v49 = vld [vmem:[%s3689_s24 + $0x258] sm:$0xff]  ;;  %v3596_v50 = vld [vmem:[%s3689_s24 + $0x340] sm:$0xff]  ;;  %v3502_v57 = vld [vmem:[%s3689_s24 + $0x50] sm:$0xff] }
  0x1e   : > { %v3539_v51 = vld [vmem:[%s3689_s24 + $0x178] sm:$0xff]  ;;  %v3568_v60 = vld [vmem:[%s3689_s24 + $0x260] sm:$0xff]  ;;  %v3597_v62 = vld [vmem:[%s3689_s24 + $0x348] sm:$0xff] }
  0x1f   : > { %v3540_v63 = vld [vmem:[%s3689_s24 + $0x180] sm:$0xff]  ;;  %v3503_v6 = vld [vmem:[%s3689_s24 + $0x58] sm:$0xff]  ;;  %v3569_v9 = vld [vmem:[%s3689_s24 + $0x268] sm:$0xff] }
  0x28   : > { %3363 = vmatmul.msk.bf16.gmra.mxu0 %vm1083_vm2, %v3493_v10  ;;  %3460 = vmatmul.msk.bf16.gmra.mxu3 %vm1083_vm2, %v3590_v18 }
  0x29   : > { %3429 = vmatmul.msk.bf16.gmra.mxu2 %vm1083_vm2, %v3559_v11  ;;  %3403 = vmatmul.msk.bf16.gmra.mxu1 %vm1083_vm2, %v3533_v19  ;;  %v3598_v11 = vld [vmem:[%s3689_s24 + $0x350] sm:$0xff]  ;;  %v3504_v19 = vld [vmem:[%s3689_s24 + $0x60] sm:$0xff] }
  0x38   : > { %3364 = vmatmul.msk.bf16.gmra.mxu0 %vm1083_vm2, %v3494_v12  ;;  %3461 = vmatmul.msk.bf16.gmra.mxu3 %vm1083_vm2, %v3591_v22  ;;  %v3541_v12 = vld [vmem:[%s3689_s24 + $0x188] sm:$0xff]  ;;  %v3570_v22 = vld [vmem:[%s3689_s24 + $0x270] sm:$0xff] }
  0x39   : > { %3430 = vmatmul.msk.bf16.gmra.mxu2 %vm1083_vm2, %v3560_v13  ;;  %3404 = vmatmul.msk.bf16.gmra.mxu1 %vm1083_vm2, %v3534_v23 }
  0x48   : > { %3365 = vmatmul.msk.bf16.gmra.mxu0 %vm1083_vm2, %v3495_v16  ;;  %3462 = vmatmul.msk.bf16.gmra.mxu3 %vm1083_vm2, %v3592_v26 }
  0x49   : > { %3431 = vmatmul.msk.bf16.gmra.mxu2 %vm1083_vm2, %v3561_v17  ;;  %3405 = vmatmul.msk.bf16.gmra.mxu1 %vm1083_vm2, %v3535_v27 }
  0x58   : > { %3366 = vmatmul.msk.bf16.gmra.mxu0 %vm1083_vm2, %v3496_v20  ;;  %3463 = vmatmul.msk.bf16.gmra.mxu3 %vm1083_vm2, %v3593_v30 }
  0x59   : > { %3432 = vmatmul.msk.bf16.gmra.mxu2 %vm1083_vm2, %v3562_v21  ;;  %3406 = vmatmul.msk.bf16.gmra.mxu1 %vm1083_vm2, %v3536_v31 }
  0x68   : > { %3367 = vmatmul.msk.bf16.gmra.mxu0 %vm1083_vm2, %v3497_v24  ;;  %3464 = vmatmul.msk.bf16.gmra.mxu3 %vm1083_vm2, %v3594_v34  ;;  %v3599_v24 = vld [vmem:[%s3689_s24 + $0x358] sm:$0xff]  ;;  %v3600_v34 = vld [vmem:[%s3689_s24 + $0x360] sm:$0xff] }
  0x69   : > { %3433 = vmatmul.msk.bf16.gmra.mxu2 %vm1083_vm2, %v3563_v25  ;;  %3407 = vmatmul.msk.bf16.gmra.mxu1 %vm1083_vm2, %v3537_v35  ;;  %v3542_v25 = vld [vmem:[%s3689_s24 + $0x190] sm:$0xff]  ;;  %v3543_v35 = vld [vmem:[%s3689_s24 + $0x198] sm:$0xff] }
  0x78   : > { %3368 = vmatmul.msk.bf16.gmra.mxu0 %vm1083_vm2, %v3498_v28  ;;  %3465 = vmatmul.msk.bf16.gmra.mxu3 %vm1083_vm2, %v3595_v39 }
  0x79   : > { %3434 = vmatmul.msk.bf16.gmra.mxu2 %vm1083_vm2, %v3564_v29  ;;  %3408 = vmatmul.msk.bf16.gmra.mxu1 %vm1083_vm2, %v3538_v40  ;;  %v3505_v29 = vld [vmem:[%s3689_s24 + $0x68] sm:$0xff]  ;;  %v3506_v40 = vld [vmem:[%s3689_s24 + $0x70] sm:$0xff] }
  0x88   : > { %3369 = vmatmul.msk.bf16.gmra.mxu0 %vm1083_vm2, %v3499_v32  ;;  %3466 = vmatmul.msk.bf16.gmra.mxu3 %vm1083_vm2, %v3596_v50  ;;  %v3571_v32 = vld [vmem:[%s3689_s24 + $0x278] sm:$0xff] }
  0x89   : > { %3435 = vmatmul.msk.bf16.gmra.mxu2 %vm1083_vm2, %v3565_v33  ;;  %3409 = vmatmul.msk.bf16.gmra.mxu1 %vm1083_vm2, %v3539_v51  ;;  %v3601_v51 = vld [vmem:[%s3689_s24 + $0x368] sm:$0xff] }
  0x95   : > { %v1484_v37 = vpop.f32.mrf.mxu0 }
  0x96   : > { %v2124_v43 = vmax.f32 %v1484_v37, 0.0  ;;  %v3777_v61 = vpop.f32.mrf.mxu1 }
  0x98   : > { %3370 = vmatmul.msk.bf16.gmra.mxu0 %vm1083_vm2, %v3500_v36  ;;  %3467 = vmatmul.msk.bf16.gmra.mxu3 %vm1083_vm2, %v3597_v62  ;;  %v3507_v62 = vld [vmem:[%s3689_s24 + $0x78] sm:$0xff] }
  0x99   : > { %3436 = vmatmul.msk.bf16.gmra.mxu2 %vm1083_vm2, %v3566_v38  ;;  %3410 = vmatmul.msk.bf16.gmra.mxu1 %vm1083_vm2, %v3540_v63 }
  0x9b   : > { %v1969_v39 = vpop.f32.mrf.mxu3 }
  0x9c   : > { %v3755_v41 = vpop.f32.mrf.mxu2 }
  0x9d   : > { %v1486_v42 = vpop.f32.mrf.mxu0 }
  0x9e   : > { %v2125_v44 = vmax.f32 %v1486_v42, 0.0  ;;  %v3787_v4 = vpop.f32.mrf.mxu1 }
  0xa0   : > { %v3757_v45 = vpack.c.bf16 %v2125_v44, %v2124_v43  ;;  %v3572_v44 = vld [vmem:[%s3689_s24 + $0x280] sm:$0xff] }
  0xa3   : > { %v1971_v50 = vpop.f32.mrf.mxu3 }
  0xa4   : > { %v3760_v47 = vpop.f32.mrf.mxu2 }
  0xa5   : > { %v1489_v48 = vpop.f32.mrf.mxu0 }
  0xa6   : > { %v2126_v54 = vmax.f32 %v1489_v48, 0.0  ;;  %v3795_v10 = vpop.f32.mrf.mxu1  ;;  %v3544_v48 = vld [vmem:[%s3689_s24 + $0x1a0] sm:$0xff] }
  0xa8   : > { %3371 = vmatmul.msk.bf16.gmra.mxu0 %vm1083_vm2, %v3501_v46  ;;  %3468 = vmatmul.msk.bf16.gmra.mxu3 %vm1083_vm2, %v3598_v11  ;;  %v3602_v11 = vld [vmem:[%s3689_s24 + $0x370] sm:$0xff] }
  0xa9   : > { %3437 = vmatmul.msk.bf16.gmra.mxu2 %vm1083_vm2, %v3567_v49  ;;  %3411 = vmatmul.msk.bf16.gmra.mxu1 %vm1083_vm2, %v3541_v12  ;;  %v2318_v49 = vmax.f32 %v1969_v39, 0.0 }
  0xac   : > { %v3769_v52 = vpop.f32.mrf.mxu2 }
  0xad   : > { %v1491_v53 = vpop.f32.mrf.mxu0 }
  0xae   : > { %v2127_v55 = vmax.f32 %v1491_v53, 0.0  ;;  %v3805_v17 = vpop.f32.mrf.mxu1  ;;  %v2319_v53 = vmax.f32 %v1971_v50, 0.0 }
  0xb0   : > { %v3771_v56 = vpack.c.bf16 %v2127_v55, %v2126_v54 }
  0xb4   : > { %v3774_v58 = vpop.f32.mrf.mxu2 }
  0xb5   : > { %v1494_v59 = vpop.f32.mrf.mxu0 }
  0xb6   : > { %v2128_v2 = vmax.f32 %v1494_v59, 0.0  ;;  %v3815_v23 = vpop.f32.mrf.mxu1 }
  0xb8   : > { %3372 = vmatmul.msk.bf16.gmra.mxu0 %vm1083_vm2, %v3502_v57  ;;  %3469 = vmatmul.msk.bf16.gmra.mxu3 %vm1083_vm2, %v3599_v24  ;;  %v3861_v57 = vpack.c.bf16 %v2319_v53, %v2318_v49  ;;  %v3574_v49 = vld [vmem:[%s3689_s24 + $0x290] sm:$0xff] }
  0xb9   : > { %3438 = vmatmul.msk.bf16.gmra.mxu2 %vm1083_vm2, %v3568_v60  ;;  %3412 = vmatmul.msk.bf16.gmra.mxu1 %vm1083_vm2, %v3542_v25  ;;  %v1974_v60 = vpop.f32.mrf.mxu3 }
  0xba   : > { %4535 = vst [vmem:[#allocation3_spill] sm:$0xff] %v3861_v57  ;;  %v3578_v57 = vld [vmem:[%s3689_s24 + $0x2b0] sm:$0xff] }
  0xbc   : > { %v3785_v0 = vpop.f32.mrf.mxu2 }
  0xbd   : > { %v1496_v1 = vpop.f32.mrf.mxu0 }
  0xbe   : > { %v2129_v3 = vmax.f32 %v1496_v1, 0.0  ;;  %v3827_v28 = vpop.f32.mrf.mxu1 }
  0xc0   : > { %v3789_v5 = vpack.c.bf16 %v2129_v3, %v2128_v2  ;;  %v3573_v2 = vld [vmem:[%s3689_s24 + $0x288] sm:$0xff] }
  0xc4   : > { %v3792_v7 = vpop.f32.mrf.mxu2 }
  0xc5   : > { %v1499_v8 = vpop.f32.mrf.mxu0 }
  0xc6   : > { %v2130_v15 = vmax.f32 %v1499_v8, 0.0  ;;  %v3835_v33 = vpop.f32.mrf.mxu1  ;;  %v2320_v8 = vmax.f32 %v1974_v60, 0.0  ;;  %v3546_v60 = vld [vmem:[%s3689_s24 + $0x1b0] sm:$0xff] }
  0xc8   : > { %3373 = vmatmul.msk.bf16.gmra.mxu0 %vm1083_vm2, %v3503_v6  ;;  %3470 = vmatmul.msk.bf16.gmra.mxu3 %vm1083_vm2, %v3600_v34  ;;  %v3545_v6 = vld [vmem:[%s3689_s24 + $0x1a8] sm:$0xff] }
  0xc9   : > { %3439 = vmatmul.msk.bf16.gmra.mxu2 %vm1083_vm2, %v3569_v9  ;;  %3413 = vmatmul.msk.bf16.gmra.mxu1 %vm1083_vm2, %v3543_v35  ;;  %v1976_v9 = vpop.f32.mrf.mxu3 }
  0xca   : > { %v2321_v12 = vmax.f32 %v1976_v9, 0.0 }
  0xcc   : > { %v3803_v13 = vpop.f32.mrf.mxu2 }
  0xcd   : > { %v1501_v14 = vpop.f32.mrf.mxu0 }
  0xce   : > { %v2131_v16 = vmax.f32 %v1501_v14, 0.0  ;;  %v3845_v38 = vpop.f32.mrf.mxu1 }
  0xd0   : > { %v3807_v18 = vpack.c.bf16 %v2131_v16, %v2130_v15  ;;  %v3879_v16 = vpack.c.bf16 %v2321_v12, %v2320_v8 }
  0xd1   : > { %v1979_v34 = vpop.f32.mrf.mxu3 }
  0xd2   : > { %4538 = vst [vmem:[#allocation6_spill] sm:$0xff] %v3879_v16 }
  0xd4   : > { %v3810_v20 = vpop.f32.mrf.mxu2 }
  0xd5   : > { %v3812_v21 = vpop.f32.mrf.mxu0 }
  0xd6   : > { %v3851_v46 = vpop.f32.mrf.mxu1 }
  0xd8   : > { %3374 = vmatmul.msk.bf16.gmra.mxu0 %vm1083_vm2, %v3504_v19  ;;  %3471 = vmatmul.msk.bf16.gmra.mxu3 %vm1083_vm2, %v3601_v51 }
  0xd9   : > { %3440 = vmatmul.msk.bf16.gmra.mxu2 %vm1083_vm2, %v3570_v22  ;;  %3414 = vmatmul.msk.bf16.gmra.mxu1 %vm1083_vm2, %v3544_v48 }
  0xdc   : > { %v3823_v26 = vpop.f32.mrf.mxu2 }
  0xdd   : > { %v3825_v27 = vpop.f32.mrf.mxu0 }
  0xde   : > { %v3863_v59 = vpop.f32.mrf.mxu1  ;;  %v2133_v53 = vmax.f32 %v3825_v27, 0.0 }
  0xe4   : > { %v3830_v30 = vpop.f32.mrf.mxu2 }
  0xe5   : > { %v3832_v31 = vpop.f32.mrf.mxu0 }
  0xe6   : > { %v3869_v3 = vpop.f32.mrf.mxu1  ;;  %v2134_v50 = vmax.f32 %v3832_v31, 0.0 }
  0xe8   : > { %3375 = vmatmul.msk.bf16.gmra.mxu0 %vm1083_vm2, %v3505_v29  ;;  %3472 = vmatmul.msk.bf16.gmra.mxu3 %vm1083_vm2, %v3602_v11 }
  0xe9   : > { %3441 = vmatmul.msk.bf16.gmra.mxu2 %vm1083_vm2, %v3571_v32  ;;  %3415 = vmatmul.msk.bf16.gmra.mxu1 %vm1083_vm2, %v3545_v6 }
  0xec   : > { %v3843_v36 = vpop.f32.mrf.mxu2 }
  0xed   : > { %v1511_v37 = vpop.f32.mrf.mxu0 }
  0xee   : > { %v3881_v24 = vpop.f32.mrf.mxu1  ;;  %v2135_v35 = vmax.f32 %v1511_v37, 0.0  ;;  %v2132_v37 = vmax.f32 %v3812_v21, 0.0 }
  0xf0   : > { %v2384_v31 = vpack.c.bf16 %v2133_v53, %v2132_v37 }
  0xf4   : > { %v3848_v42 = vpop.f32.mrf.mxu2 }
  0xf5   : > { %v1514_v43 = vpop.f32.mrf.mxu0 }
  0xf6   : > { %v2136_v32 = vmax.f32 %v1514_v43, 0.0  ;;  %v3888_v51 = vpop.f32.mrf.mxu1  ;;  %v2385_v43 = vpack.c.bf16 %v2135_v35, %v2134_v50  ;;  %v3547_v35 = vld [vmem:[%s3689_s24 + $0x1b8] sm:$0xff] }
  0xf8   : > { %3376 = vmatmul.msk.bf16.gmra.mxu0 %vm1083_vm2, %v3506_v40  ;;  %v3508_v40 = vld [vmem:[%s3689_s24 + $0x80] sm:$0xff] }
  0xf9   : > { %3442 = vmatmul.msk.bf16.gmra.mxu2 %vm1083_vm2, %v3572_v44  ;;  %3416 = vmatmul.msk.bf16.gmra.mxu1 %vm1083_vm2, %v3546_v60  ;;  %v3510_v60 = vld [vmem:[%s3689_s24 + $0x90] sm:$0xff] }
  0xfc   : > { %v3859_v54 = vpop.f32.mrf.mxu2 }
  0xfd   : > { %4534 = vst [vmem:[#allocation2_spill] sm:$0xff] %v3859_v54  ;;  %v1516_v55 = vpop.f32.mrf.mxu0 }
  0xfe   : > { %v2137_v25 = vmax.f32 %v1516_v55, 0.0  ;;  %v3603_v55 = vld [vmem:[%s3689_s24 + $0x378] sm:$0xff]  ;;  %v3902_v21 = vpop.f32.mrf.mxu1 }
 0x100   : > { %v2386_v39 = vpack.c.bf16 %v2137_v25, %v2136_v32 }
 0x104   : > { %v3866_v63 = vpop.f32.mrf.mxu2 }
 0x105   : > { %4536 = vst [vmem:[#allocation4_spill] sm:$0xff] %v3866_v63  ;;  %v1519_v1 = vpop.f32.mrf.mxu0 }
 0x106   : > { %v2138_v19 = vmax.f32 %v1519_v1, 0.0  ;;  %v1981_v1 = vpop.f32.mrf.mxu3  ;;  %3473 = vmatmul.msk.bf16.gmra.mxu3 %vm1083_vm2, %v3603_v55  ;;  %v3912_v32 = vpop.f32.mrf.mxu1 }
 0x108   : > { %3377 = vmatmul.msk.bf16.gmra.mxu0 %vm1083_vm2, %v3507_v62  ;;  %v2322_v62 = vmax.f32 %v1979_v34, 0.0  ;;  %v3604_v34 = vld [vmem:[%s3689_s24 + $0x380] sm:$0xff] }
 0x109   : > { %3443 = vmatmul.msk.bf16.gmra.mxu2 %vm1083_vm2, %v3573_v2  ;;  %v2323_v2 = vmax.f32 %v1981_v1, 0.0  ;;  %3417 = vmatmul.msk.bf16.gmra.mxu1 %vm1083_vm2, %v3547_v35  ;;  %v3576_v1 = vld [vmem:[%s3689_s24 + $0x2a0] sm:$0xff] }
 0x10b   : > { %v3900_v8 = vpack.c.bf16 %v2323_v2, %v2322_v62 }
 0x10c   : > { %v3877_v14 = vpop.f32.mrf.mxu2 }
 0x10d   : > { %4537 = vst [vmem:[#allocation5_spill] sm:$0xff] %v3877_v14  ;;  %v1521_v15 = vpop.f32.mrf.mxu0 }
 0x10e   : > { %v2139_v22 = vmax.f32 %v1521_v15, 0.0  ;;  %4541 = vst [vmem:[#allocation9_spill] sm:$0xff] %v3900_v8  ;;  %v1984_v15 = vpop.f32.mrf.mxu3 }
 0x110   : > { %v2387_v29 = vpack.c.bf16 %v2139_v22, %v2138_v19  ;;  %v3509_v19 = vld [vmem:[%s3689_s24 + $0x88] sm:$0xff] }
 0x112   : > { %2572 = vmatpush.bf16.msrb.mxu1 %v2387_v29  ;;  %v3575_v29 = vld [vmem:[%s3689_s24 + $0x298] sm:$0xff] }
 0x114   : > { %v3884_v44 = vpop.f32.mrf.mxu2 }
 0x115   : > { %4539 = vst [vmem:[#allocation7_spill] sm:$0xff] %v3884_v44  ;;  %v1524_v48 = vpop.f32.mrf.mxu0 }
 0x116   : > { %2573 = vmatpush.bf16.msrb.mxu1 %v2386_v39  ;;  %v2140_v9 = vmax.f32 %v1524_v48, 0.0  ;;  %v2324_v39 = vmax.f32 %v1984_v15, 0.0 }
 0x118   : > { %3378 = vmatmul.msk.bf16.gmra.mxu0 %vm1083_vm2, %v3508_v40 }
 0x119   : > { %3444 = vmatmul.msk.bf16.gmra.mxu2 %vm1083_vm2, %v3574_v49 }
 0x11a   : > { %2574 = vmatpush.bf16.msrb.mxu1 %v2385_v43  ;;  %v3926_v43 = vpop.f32.mrf.mxu1 }
 0x11c   : > { %v3898_v27 = vpop.f32.mrf.mxu2 }
 0x11d   : > { %4540 = vst [vmem:[#allocation8_spill] sm:$0xff] %v3898_v27  ;;  %v1526_v6 = vpop.f32.mrf.mxu0  ;;  %v3580_v27 = vld [vmem:[%s3689_s24 + $0x2c0] sm:$0xff] }
 0x11e   : > { %v2141_v11 = vmax.f32 %v1526_v6, 0.0  ;;  %2575 = vmatpush.bf16.msrb.mxu1 %v2384_v31  ;;  %v3605_v31 = vld [vmem:[%s3689_s24 + $0x388] sm:$0xff]  ;;  %v3548_v6 = vld [vmem:[%s3689_s24 + $0x1c0] sm:$0xff] }
 0x11f   : > { %3418 = vmatmul.msk.bf16.gmra.mxu1 %vm1083_vm2, %v3548_v6 }
 0x120   : > { %v3904_v12 = vpack.c.bf16 %v2141_v11, %v2140_v9 }
 0x122   : > { %2576 = vmatpush.bf16.msrb.mxu1 %v3807_v18  ;;  %v1986_v18 = vpop.f32.mrf.mxu3  ;;  %3474 = vmatmul.msk.bf16.gmra.mxu3 %vm1083_vm2, %v3604_v34  ;;  %v3934_v2 = vpop.f32.mrf.mxu1 }
 0x123   : > { %v2325_v40 = vmax.f32 %v1986_v18, 0.0  ;;  %4546 = vst [vmem:[#allocation14_spill] sm:$0xff] %v3934_v2 }
 0x124   : > { %v3908_v22 = vpop.f32.mrf.mxu2 }
 0x125   : > { %4542 = vst [vmem:[#allocation10_spill] sm:$0xff] %v3908_v22  ;;  %v1529_v25 = vpop.f32.mrf.mxu0  ;;  %v3923_v49 = vpack.c.bf16 %v2325_v40, %v2324_v39  ;;  %v3511_v40 = vld [vmem:[%s3689_s24 + $0x98] sm:$0xff]  ;;  %v3514_v22 = vld [vmem:[%s3689_s24 + $0xb0] sm:$0xff] }
 0x126   : > { %2577 = vmatpush.bf16.msrb.mxu1 %v3789_v5  ;;  %v2142_v50 = vmax.f32 %v1529_v25, 0.0 }
 0x127   : > { %4544 = vst [vmem:[#allocation12_spill] sm:$0xff] %v3923_v49 }
 0x128   : > { %3379 = vmatmul.msk.bf16.gmra.mxu0 %vm1083_vm2, %v3509_v19 }
 0x129   : > { %3445 = vmatmul.msk.bf16.gmra.mxu2 %vm1083_vm2, %v3575_v29 }
 0x12a   : > { %2578 = vmatpush.bf16.msrb.mxu1 %v3771_v56  ;;  %v1989_v55 = vpop.f32.mrf.mxu3  ;;  %v3946_v35 = vpop.f32.mrf.mxu1 }
 0x12b   : > { %v2326_v9 = vmax.f32 %v1989_v55, 0.0  ;;  %4549 = vst [vmem:[#allocation17_spill] sm:$0xff] %v3946_v35 }
 0x12c   : > { %v3921_v5 = vpop.f32.mrf.mxu2 }
 0x12d   : > { %4543 = vst [vmem:[#allocation11_spill] sm:$0xff] %v3921_v5  ;;  %v1531_v48 = vpop.f32.mrf.mxu0 }
 0x12e   : > { %v2143_v53 = vmax.f32 %v1531_v48, 0.0  ;;  %2579 = vmatpush.bf16.msrb.mxu1 %v3757_v45 }
 0x130   : > { %v3928_v56 = vpack.c.bf16 %v2143_v53, %v2142_v50  ;;  %v3577_v53 = vld [vmem:[%s3689_s24 + $0x2a8] sm:$0xff] }
 0x132   : > { %v1991_v45 = vpop.f32.mrf.mxu3  ;;  %3475 = vmatmul.msk.bf16.gmra.mxu3 %vm1083_vm2, %v3605_v31  ;;  %v3954_v55 = vpop.f32.mrf.mxu1 }
 0x133   : > { %v2327_v11 = vmax.f32 %v1991_v45, 0.0  ;;  %4551 = vst [vmem:[#allocation19_spill] sm:$0xff] %v3954_v55 }
 0x134   : > { %v3931_v62 = vpop.f32.mrf.mxu2 }
 0x135   : > { %4545 = vst [vmem:[#allocation13_spill] sm:$0xff] %v3931_v62  ;;  %v1534_v37 = vpop.f32.mrf.mxu0  ;;  %v3944_v25 = vpack.c.bf16 %v2327_v11, %v2326_v9 }
 0x136   : > { %v2144_v29 = vmax.f32 %v1534_v37, 0.0 }
 0x137   : > { %4548 = vst [vmem:[#allocation16_spill] sm:$0xff] %v3944_v25 }
 0x138   : > { %3380 = vmatmul.msk.bf16.gmra.mxu0 %vm1083_vm2, %v3510_v60  ;;  %v3606_v60 = vld [vmem:[%s3689_s24 + $0x390] sm:$0xff] }
 0x139   : > { %3446 = vmatmul.msk.bf16.gmra.mxu2 %vm1083_vm2, %v3576_v1  ;;  %v3549_v1 = vld [vmem:[%s3689_s24 + $0x1c8] sm:$0xff] }
 0x13a   : > { %v1994_v18 = vpop.f32.mrf.mxu3  ;;  %3419 = vmatmul.msk.bf16.gmra.mxu1 %vm1083_vm2, %v3549_v1 }
 0x13b   : > { %v2328_v31 = vmax.f32 %v1994_v18, 0.0 }
 0x13c   : > { %v3942_v15 = vpop.f32.mrf.mxu2 }
 0x13d   : > { %4547 = vst [vmem:[#allocation15_spill] sm:$0xff] %v3942_v15  ;;  %v1536_v19 = vpop.f32.mrf.mxu0 }
 0x13e   : > { %v2145_v34 = vmax.f32 %v1536_v19, 0.0 }
 0x140   : > { %v3948_v39 = vpack.c.bf16 %v2145_v34, %v2144_v29  ;;  %v3966_v34 = vpop.f32.mrf.mxu1 }
 0x141   : > { %4554 = vst [vmem:[#allocation22_spill] sm:$0xff] %v3966_v34  ;;  %v3582_v34 = vld [vmem:[%s3689_s24 + $0x2d0] sm:$0xff] }
 0x142   : > { %v1996_v37 = vpop.f32.mrf.mxu3  ;;  %3476 = vmatmul.msk.bf16.gmra.mxu3 %vm1083_vm2, %v3606_v60 }
 0x143   : > { %v2329_v6 = vmax.f32 %v1996_v37, 0.0 }
 0x144   : > { %v3951_v48 = vpop.f32.mrf.mxu2 }
 0x145   : > { %4550 = vst [vmem:[#allocation18_spill] sm:$0xff] %v3951_v48  ;;  %v1539_v50 = vpop.f32.mrf.mxu0  ;;  %v3964_v11 = vpack.c.bf16 %v2329_v6, %v2328_v31  ;;  %v3607_v31 = vld [vmem:[%s3689_s24 + $0x398] sm:$0xff] }
 0x146   : > { %v2146_v19 = vmax.f32 %v1539_v50, 0.0  ;;  %v3550_v50 = vld [vmem:[%s3689_s24 + $0x1d0] sm:$0xff] }
 0x147   : > { %4553 = vst [vmem:[#allocation21_spill] sm:$0xff] %v3964_v11  ;;  %v3579_v11 = vld [vmem:[%s3689_s24 + $0x2b8] sm:$0xff] }
 0x148   : > { %3381 = vmatmul.msk.bf16.gmra.mxu0 %vm1083_vm2, %v3511_v40  ;;  %v3976_v60 = vpop.f32.mrf.mxu1 }
 0x149   : > { %3447 = vmatmul.msk.bf16.gmra.mxu2 %vm1083_vm2, %v3577_v53  ;;  %v3512_v53 = vld [vmem:[%s3689_s24 + $0xa0] sm:$0xff]  ;;  %4556 = vst [vmem:[#allocation24_spill] sm:$0xff] %v3976_v60 }
 0x14a   : > { %v1999_v40 = vpop.f32.mrf.mxu3  ;;  %3420 = vmatmul.msk.bf16.gmra.mxu1 %vm1083_vm2, %v3550_v50  ;;  %v3551_v50 = vld [vmem:[%s3689_s24 + $0x1d8] sm:$0xff] }
 0x14b   : > { %v2330_v6 = vmax.f32 %v1999_v40, 0.0  ;;  %v3513_v40 = vld [vmem:[%s3689_s24 + $0xa8] sm:$0xff] }
 0x14c   : > { %v3962_v9 = vpop.f32.mrf.mxu2 }
 0x14d   : > { %4552 = vst [vmem:[#allocation20_spill] sm:$0xff] %v3962_v9  ;;  %v1541_v45 = vpop.f32.mrf.mxu0  ;;  %v3581_v9 = vld [vmem:[%s3689_s24 + $0x2c8] sm:$0xff] }
 0x14e   : > { %v2147_v29 = vmax.f32 %v1541_v45, 0.0 }
 0x150   : > { %v3968_v18 = vpack.c.bf16 %v2147_v29, %v2146_v19 }
 0x152   : > { %v2001_v45 = vpop.f32.mrf.mxu3  ;;  %3477 = vmatmul.msk.bf16.gmra.mxu3 %vm1083_vm2, %v3607_v31  ;;  %v3608_v31 = vld [vmem:[%s3689_s24 + $0x3a0] sm:$0xff] }
 0x153   : > { %v2331_v19 = vmax.f32 %v2001_v45, 0.0 }
 0x154   : > { %v3971_v37 = vpop.f32.mrf.mxu2 }
 0x155   : > { %4555 = vst [vmem:[#allocation23_spill] sm:$0xff] %v3971_v37  ;;  %v3973_v1 = vpop.f32.mrf.mxu0  ;;  %v3988_v8 = vpack.c.bf16 %v2331_v19, %v2330_v6 }
 0x157   : > { %4558 = vst [vmem:[#allocation26_spill] sm:$0xff] %v3988_v8 }
 0x158   : > { %3382 = vmatmul.msk.bf16.gmra.mxu0 %vm1083_vm2, %v3512_v53  ;;  %v3990_v53 = vpop.f32.mrf.mxu1 }
 0x159   : > { %3448 = vmatmul.msk.bf16.gmra.mxu2 %vm1083_vm2, %v3578_v57  ;;  %4559 = vst [vmem:[#allocation27_spill] sm:$0xff] %v3990_v53  ;;  %v3618_v53 = vld [vmem:[%s3689_s24 + $0x3f0] sm:$0xff] }
 0x15a   : > { %v2004_v49 = vpop.f32.mrf.mxu3  ;;  %3421 = vmatmul.msk.bf16.gmra.mxu1 %vm1083_vm2, %v3551_v50 }
 0x15b   : > { %v2332_v63 = vmax.f32 %v2004_v49, 0.0 }
 0x15c   : > { %v3984_v29 = vpop.f32.mrf.mxu2 }
 0x15d   : > { %4557 = vst [vmem:[#allocation25_spill] sm:$0xff] %v3984_v29  ;;  %v3986_v16 = vpop.f32.mrf.mxu0 }
 0x160   : > { %v3998_v45 = vpop.f32.mrf.mxu1 }
 0x161   : > { %4561 = vst [vmem:[#allocation29_spill] sm:$0xff] %v3998_v45 }
 0x162   : > { %v2006_v6 = vpop.f32.mrf.mxu3  ;;  %3478 = vmatmul.msk.bf16.gmra.mxu3 %vm1083_vm2, %v3608_v31  ;;  %v3552_v31 = vld [vmem:[%s3689_s24 + $0x1e0] sm:$0xff] }
 0x163   : > { %v2333_v19 = vmax.f32 %v2006_v6, 0.0 }
 0x164   : > { %v3993_v25 = vpop.f32.mrf.mxu2 }
 0x165   : > { %4560 = vst [vmem:[#allocation28_spill] sm:$0xff] %v3993_v25  ;;  %v3995_v57 = vpop.f32.mrf.mxu0  ;;  %v4008_v44 = vpack.c.bf16 %v2333_v19, %v2332_v63  ;;  %v3609_v19 = vld [vmem:[%s3689_s24 + $0x3a8] sm:$0xff] }
 0x167   : > { %4563 = vst [vmem:[#allocation31_spill] sm:$0xff] %v4008_v44 }
 0x168   : > { %3383 = vmatmul.msk.bf16.gmra.mxu0 %vm1083_vm2, %v3513_v40  ;;  %v4010_v40 = vpop.f32.mrf.mxu1 }
 0x169   : > { %3449 = vmatmul.msk.bf16.gmra.mxu2 %vm1083_vm2, %v3579_v11  ;;  %4564 = vst [vmem:[#allocation32_spill] sm:$0xff] %v4010_v40 }
 0x16a   : > { %v2009_v14 = vpop.f32.mrf.mxu3  ;;  %3422 = vmatmul.msk.bf16.gmra.mxu1 %vm1083_vm2, %v3552_v31  ;;  %v3553_v31 = vld [vmem:[%s3689_s24 + $0x1e8] sm:$0xff] }
 0x16b   : > { %v2334_v50 = vmax.f32 %v2009_v14, 0.0  ;;  %v3515_v14 = vld [vmem:[%s3689_s24 + $0xb8] sm:$0xff] }
 0x16c   : > { %v4006_v8 = vpop.f32.mrf.mxu2 }
 0x16d   : > { %4562 = vst [vmem:[#allocation30_spill] sm:$0xff] %v4006_v8  ;;  %v1551_v54 = vpop.f32.mrf.mxu0 }
 0x170   : > { %v4016_v6 = vpop.f32.mrf.mxu1 }
 0x171   : > { %4566 = vst [vmem:[#allocation34_spill] sm:$0xff] %v4016_v6 }
 0x172   : > { %v2011_v63 = vpop.f32.mrf.mxu3  ;;  %3479 = vmatmul.msk.bf16.gmra.mxu3 %vm1083_vm2, %v3609_v19 }
 0x173   : > { %v2335_v44 = vmax.f32 %v2011_v63, 0.0 }
 0x174   : > { %v4013_v49 = vpop.f32.mrf.mxu2 }
 0x175   : > { %4565 = vst [vmem:[#allocation33_spill] sm:$0xff] %v4013_v49  ;;  %v1554_v11 = vpop.f32.mrf.mxu0  ;;  %v4026_v48 = vpack.c.bf16 %v2335_v44, %v2334_v50 }
 0x176   : > { %v2152_v8 = vmax.f32 %v1554_v11, 0.0 }
 0x177   : > { %4568 = vst [vmem:[#allocation36_spill] sm:$0xff] %v4026_v48 }
 0x178   : > { %3384 = vmatmul.msk.bf16.gmra.mxu0 %vm1083_vm2, %v3514_v22  ;;  %v4028_v22 = vpop.f32.mrf.mxu1 }
 0x179   : > { %3450 = vmatmul.msk.bf16.gmra.mxu2 %vm1083_vm2, %v3580_v27  ;;  %4569 = vst [vmem:[#allocation37_spill] sm:$0xff] %v4028_v22 }
 0x17a   : > { %v2014_v15 = vpop.f32.mrf.mxu3  ;;  %3423 = vmatmul.msk.bf16.gmra.mxu1 %vm1083_vm2, %v3553_v31  ;;  %v2151_v31 = vmax.f32 %v1551_v54, 0.0  ;;  %v2148_v54 = vmax.f32 %v3973_v1, 0.0 }
 0x17b   : > { %v2336_v63 = vmax.f32 %v2014_v15, 0.0 }
 0x17c   : > { %v4024_v62 = vpop.f32.mrf.mxu2 }
 0x17d   : > { %4567 = vst [vmem:[#allocation35_spill] sm:$0xff] %v4024_v62  ;;  %v1556_v5 = vpop.f32.mrf.mxu0  ;;  %v3610_v62 = vld [vmem:[%s3689_s24 + $0x3b0] sm:$0xff] }
 0x17e   : > { %v2153_v15 = vmax.f32 %v1556_v5, 0.0 }
 0x180   : > { %v4034_v25 = vpop.f32.mrf.mxu1  ;;  %v2394_v35 = vpack.c.bf16 %v2153_v15, %v2152_v8 }
 0x181   : > { %4571 = vst [vmem:[#allocation39_spill] sm:$0xff] %v4034_v25 }
 0x182   : > { %v2016_v19 = vpop.f32.mrf.mxu3  ;;  %3480 = vmatmul.msk.bf16.gmra.mxu3 %vm1083_vm2, %v3610_v62  ;;  %v3516_v62 = vld [vmem:[%s3689_s24 + $0xc0] sm:$0xff] }
 0x183   : > { %v2337_v44 = vmax.f32 %v2016_v19, 0.0 }
 0x184   : > { %v4031_v37 = vpop.f32.mrf.mxu2 }
 0x185   : > { %4570 = vst [vmem:[#allocation38_spill] sm:$0xff] %v4031_v37  ;;  %v1559_v27 = vpop.f32.mrf.mxu0  ;;  %v4044_v37 = vpack.c.bf16 %v2337_v44, %v2336_v63  ;;  %v2150_v63 = vmax.f32 %v3995_v57, 0.0 }
 0x186   : > { %v2154_v29 = vmax.f32 %v1559_v27, 0.0  ;;  %v3554_v27 = vld [vmem:[%s3689_s24 + $0x1f0] sm:$0xff] }
 0x187   : > { %4573 = vst [vmem:[#allocation41_spill] sm:$0xff] %v4044_v37  ;;  %v2393_v5 = vpack.c.bf16 %v2151_v31, %v2150_v63 }
 0x188   : > { %3385 = vmatmul.msk.bf16.gmra.mxu0 %vm1083_vm2, %v3515_v14  ;;  %v4046_v49 = vpop.f32.mrf.mxu1 }
 0x189   : > { %3451 = vmatmul.msk.bf16.gmra.mxu2 %vm1083_vm2, %v3581_v9  ;;  %4574 = vst [vmem:[#allocation42_spill] sm:$0xff] %v4046_v49 }
 0x18a   : > { %v2019_v19 = vpop.f32.mrf.mxu3  ;;  %3424 = vmatmul.msk.bf16.gmra.mxu1 %vm1083_vm2, %v3554_v27  ;;  %v3555_v27 = vld [vmem:[%s3689_s24 + $0x1f8] sm:$0xff] }
 0x18b   : > { %v2338_v44 = vmax.f32 %v2019_v19, 0.0 }
 0x18c   : > { %v4042_v50 = vpop.f32.mrf.mxu2 }
 0x18d   : > { %4572 = vst [vmem:[#allocation40_spill] sm:$0xff] %v4042_v50  ;;  %v1561_v48 = vpop.f32.mrf.mxu0 }
 0x18e   : > { %v2155_v14 = vmax.f32 %v1561_v48, 0.0  ;;  %v2149_v48 = vmax.f32 %v3986_v16, 0.0 }
 0x190   : > { %v2395_v9 = vpack.c.bf16 %v2155_v14, %v2154_v29  ;;  %v3611_v29 = vld [vmem:[%s3689_s24 + $0x3b8] sm:$0xff]  ;;  %v4056_v11 = vpop.f32.mrf.mxu1  ;;  %v2392_v16 = vpack.c.bf16 %v2149_v48, %v2148_v54 }
 0x192   : > { %2585 = vmatpush.bf16.msrb.mxu2 %v2395_v9  ;;  %v2021_v8 = vpop.f32.mrf.mxu3  ;;  %3481 = vmatmul.msk.bf16.gmra.mxu3 %vm1083_vm2, %v3611_v29  ;;  %v3612_v29 = vld [vmem:[%s3689_s24 + $0x3c0] sm:$0xff] }
 0x193   : > { %v2339_v14 = vmax.f32 %v2021_v8, 0.0 }
 0x194   : > { %v4049_v2 = vpop.f32.mrf.mxu2 }
 0x195   : > { %4575 = vst [vmem:[#allocation43_spill] sm:$0xff] %v4049_v2  ;;  %v1564_v50 = vpop.f32.mrf.mxu0  ;;  %v4065_v15 = vpack.c.bf16 %v2339_v14, %v2338_v44 }
 0x196   : > { %2586 = vmatpush.bf16.msrb.mxu2 %v2394_v35 }
 0x197   : > { %4577 = vst [vmem:[#allocation45_spill] sm:$0xff] %v4065_v15 }
 0x198   : > { %3386 = vmatmul.msk.bf16.gmra.mxu0 %vm1083_vm2, %v3516_v62  ;;  %v4069_v19 = vpop.f32.mrf.mxu1  ;;  %v3517_v62 = vld [vmem:[%s3689_s24 + $0xc8] sm:$0xff] }
 0x199   : > { %3452 = vmatmul.msk.bf16.gmra.mxu2 %vm1083_vm2, %v3582_v34  ;;  %v2156_v34 = vmax.f32 %v1564_v50, 0.0 }
 0x19a   : > { %2587 = vmatpush.bf16.msrb.mxu2 %v2393_v5  ;;  %v2024_v31 = vpop.f32.mrf.mxu3  ;;  %v3583_v5 = vld [vmem:[%s3689_s24 + $0x2d8] sm:$0xff]  ;;  %3425 = vmatmul.msk.bf16.gmra.mxu1 %vm1083_vm2, %v3555_v27  ;;  %v3613_v27 = vld [vmem:[%s3689_s24 + $0x3c8] sm:$0xff] }
 0x19b   : > { %v2340_v44 = vmax.f32 %v2024_v31, 0.0  ;;  %v3518_v31 = vld [vmem:[%s3689_s24 + $0xd0] sm:$0xff] }
 0x19c   : > { %v4063_v35 = vpop.f32.mrf.mxu2 }
 0x19d   : > { %4576 = vst [vmem:[#allocation44_spill] sm:$0xff] %v4063_v35  ;;  %v1566_v57 = vpop.f32.mrf.mxu0 }
 0x19e   : > { %v2157_v9 = vmax.f32 %v1566_v57, 0.0  ;;  %2588 = vmatpush.bf16.msrb.mxu2 %v2392_v16 }
 0x1a0   : > { %v4067_v1 = vpack.c.bf16 %v2157_v9, %v2156_v34  ;;  %v4079_v50 = vpop.f32.mrf.mxu1 }
 0x1a2   : > { %2589 = vmatpush.bf16.msrb.mxu2 %v3968_v18  ;;  %v2026_v18 = vpop.f32.mrf.mxu3  ;;  %3482 = vmatmul.msk.bf16.gmra.mxu3 %vm1083_vm2, %v3612_v29  ;;  %v3584_v29 = vld [vmem:[%s3689_s24 + $0x2e0] sm:$0xff] }
 0x1a3   : > { %v2341_v54 = vmax.f32 %v2026_v18, 0.0 }
 0x1a4   : > { %v4073_v63 = vpop.f32.mrf.mxu2 }
 0x1a5   : > { %4578 = vst [vmem:[#allocation46_spill] sm:$0xff] %v4073_v63  ;;  %v1569_v48 = vpop.f32.mrf.mxu0  ;;  %v4088_v14 = vpack.c.bf16 %v2341_v54, %v2340_v44 }
 0x1a6   : > { %2590 = vmatpush.bf16.msrb.mxu2 %v3948_v39  ;;  %v2158_v16 = vmax.f32 %v1569_v48, 0.0  ;;  %v3556_v48 = vld [vmem:[%s3689_s24 + $0x200] sm:$0xff] }
 0x1a7   : > { %4580 = vst [vmem:[#allocation48_spill] sm:$0xff] %v4088_v14  ;;  %v3519_v14 = vld [vmem:[%s3689_s24 + $0xd8] sm:$0xff] }
 0x1a8   : > { %3387 = vmatmul.msk.bf16.gmra.mxu0 %vm1083_vm2, %v3517_v62 }
 0x1a9   : > { %3453 = vmatmul.msk.bf16.gmra.mxu2 %vm1083_vm2, %v3583_v5 }
 0x1aa   : > { %2591 = vmatpush.bf16.msrb.mxu2 %v3928_v56  ;;  %v4093_v56 = vpop.f32.mrf.mxu1  ;;  %v2029_v9 = vpop.f32.mrf.mxu3  ;;  %3426 = vmatmul.msk.bf16.gmra.mxu1 %vm1083_vm2, %v3556_v48  ;;  %v3585_v48 = vld [vmem:[%s3689_s24 + $0x2e8] sm:$0xff] }
 0x1ab   : > { %v2342_v44 = vmax.f32 %v2029_v9, 0.0 }
 0x1ac   : > { %v4086_v39 = vpop.f32.mrf.mxu2 }
 0x1ad   : > { %4579 = vst [vmem:[#allocation47_spill] sm:$0xff] %v4086_v39  ;;  %v1571_v8 = vpop.f32.mrf.mxu0  ;;  %v3520_v39 = vld [vmem:[%s3689_s24 + $0xe0] sm:$0xff] }
 0x1ae   : > { %v2159_v57 = vmax.f32 %v1571_v8, 0.0  ;;  %2592 = vmatpush.bf16.msrb.mxu2 %v3904_v12 }
 0x1b0   : > { %v4091_v34 = vpack.c.bf16 %v2159_v57, %v2158_v16 }
 0x1b2   : > { %v4101_v18 = vpop.f32.mrf.mxu1  ;;  %v2031_v12 = vpop.f32.mrf.mxu3  ;;  %3483 = vmatmul.msk.bf16.gmra.mxu3 %vm1083_vm2, %v3613_v27  ;;  %v3614_v27 = vld [vmem:[%s3689_s24 + $0x3d0] sm:$0xff] }
 0x1b3   : > { %4582 = vst [vmem:[#allocation50_spill] sm:$0xff] %v4101_v18  ;;  %v2343_v54 = vmax.f32 %v2031_v12, 0.0 }
 0x1b4   : > { %v4096_v62 = vpop.f32.mrf.mxu2 }
 0x1b5   : > { %4581 = vst [vmem:[#allocation49_spill] sm:$0xff] %v4096_v62  ;;  %v1574_v5 = vpop.f32.mrf.mxu0  ;;  %v4109_v57 = vpack.c.bf16 %v2343_v54, %v2342_v44  ;;  %v3557_v44 = vld [vmem:[%s3689_s24 + $0x208] sm:$0xff] }
 0x1b7   : > { %4584 = vst [vmem:[#allocation52_spill] sm:$0xff] %v4109_v57 }
 0x1b8   : > { %3388 = vmatmul.msk.bf16.gmra.mxu0 %vm1083_vm2, %v3518_v31  ;;  %v2160_v31 = vmax.f32 %v1574_v5, 0.0 }
 0x1b9   : > { %3454 = vmatmul.msk.bf16.gmra.mxu2 %vm1083_vm2, %v3584_v29 }
 0x1ba   : > { %v4113_v9 = vpop.f32.mrf.mxu1  ;;  %v2034_v29 = vpop.f32.mrf.mxu3  ;;  %3427 = vmatmul.msk.bf16.gmra.mxu1 %vm1083_vm2, %v3557_v44  ;;  %v3586_v44 = vld [vmem:[%s3689_s24 + $0x2f0] sm:$0xff] }
 0x1bb   : > { %4585 = vst [vmem:[#allocation53_spill] sm:$0xff] %v4113_v9  ;;  %v2344_v54 = vmax.f32 %v2034_v29, 0.0  ;;  %v3587_v9 = vld [vmem:[%s3689_s24 + $0x2f8] sm:$0xff] }
 0x1bc   : > { %v4107_v8 = vpop.f32.mrf.mxu2 }
 0x1bd   : > { %4583 = vst [vmem:[#allocation51_spill] sm:$0xff] %v4107_v8  ;;  %v1576_v16 = vpop.f32.mrf.mxu0 }
 0x1be   : > { %v2161_v37 = vmax.f32 %v1576_v16, 0.0 }
 0x1c0   : > { %v4111_v15 = vpack.c.bf16 %v2161_v37, %v2160_v31 }
 0x1c2   : > { %v4121_v63 = vpop.f32.mrf.mxu1  ;;  %v2036_v37 = vpop.f32.mrf.mxu3  ;;  %3484 = vmatmul.msk.bf16.gmra.mxu3 %vm1083_vm2, %v3614_v27  ;;  %v3615_v27 = vld [vmem:[%s3689_s24 + $0x3d8] sm:$0xff] }
 0x1c3   : > { %4587 = vst [vmem:[#allocation55_spill] sm:$0xff] %v4121_v63  ;;  %v2345_v5 = vmax.f32 %v2036_v37, 0.0 }
 0x1c4   : > { %v4116_v12 = vpop.f32.mrf.mxu2 }
 0x1c5   : > { %4586 = vst [vmem:[#allocation54_spill] sm:$0xff] %v4116_v12  ;;  %v1579_v2 = vpop.f32.mrf.mxu0 }
 0x1c6   : > { %v2162_v57 = vmax.f32 %v1579_v2, 0.0 }
 0x1c8   : > { %3389 = vmatmul.msk.bf16.gmra.mxu0 %vm1083_vm2, %v3519_v14  ;;  %v4129_v14 = vpack.c.bf16 %v2345_v5, %v2344_v54 }
 0x1c9   : > { %3455 = vmatmul.msk.bf16.gmra.mxu2 %vm1083_vm2, %v3585_v48 }
 0x1ca   : > { %4589 = vst [vmem:[#allocation57_spill] sm:$0xff] %v4129_v14  ;;  %v4133_v29 = vpop.f32.mrf.mxu1  ;;  %v2039_v48 = vpop.f32.mrf.mxu3 }
 0x1cb   : > { %4590 = vst [vmem:[#allocation58_spill] sm:$0xff] %v4133_v29  ;;  %v2346_v2 = vmax.f32 %v2039_v48, 0.0 }
 0x1cc   : > { %v4127_v16 = vpop.f32.mrf.mxu2 }
 0x1cd   : > { %4588 = vst [vmem:[#allocation56_spill] sm:$0xff] %v4127_v16  ;;  %v1581_v31 = vpop.f32.mrf.mxu0 }
 0x1ce   : > { %v2163_v35 = vmax.f32 %v1581_v31, 0.0 }
 0x1d0   : > { %v4131_v62 = vpack.c.bf16 %v2163_v35, %v2162_v57 }
 0x1d2   : > { %v4143_v54 = vpop.f32.mrf.mxu1  ;;  %v2041_v35 = vpop.f32.mrf.mxu3  ;;  %3485 = vmatmul.msk.bf16.gmra.mxu3 %vm1083_vm2, %v3615_v27 }
 0x1d3   : > { %4592 = vst [vmem:[#allocation60_spill] sm:$0xff] %v4143_v54  ;;  %v2347_v57 = vmax.f32 %v2041_v35, 0.0 }
 0x1d4   : > { %v4136_v12 = vpop.f32.mrf.mxu2 }
 0x1d5   : > { %4591 = vst [vmem:[#allocation59_spill] sm:$0xff] %v4136_v12  ;;  %v4138_v37 = vpop.f32.mrf.mxu0  ;;  %v4151_v14 = vpack.c.bf16 %v2347_v57, %v2346_v2  ;;  %v3521_v12 = vld [vmem:[%s3689_s24 + $0xe8] sm:$0xff] }
 0x1d7   : > { %4594 = vst [vmem:[#allocation62_spill] sm:$0xff] %v4151_v14 }
 0x1d8   : > { %3390 = vmatmul.msk.bf16.gmra.mxu0 %vm1083_vm2, %v3520_v39 }
 0x1d9   : > { %3456 = vmatmul.msk.bf16.gmra.mxu2 %vm1083_vm2, %v3586_v44  ;;  %v3616_v44 = vld [vmem:[%s3689_s24 + $0x3e0] sm:$0xff] }
 0x1da   : > { %v4153_v8 = vpop.f32.mrf.mxu1  ;;  %v2044_v39 = vpop.f32.mrf.mxu3 }
 0x1db   : > { %4595 = vst [vmem:[#allocation63_spill] sm:$0xff] %v4153_v8  ;;  %v2348_v27 = vmax.f32 %v2044_v39, 0.0 }
 0x1dc   : > { %v4147_v5 = vpop.f32.mrf.mxu2 }
 0x1dd   : > { %4593 = vst [vmem:[#allocation61_spill] sm:$0xff] %v4147_v5  ;;  %v4149_v31 = vpop.f32.mrf.mxu0 }
 0x1e2   : > { %v4161_v35 = vpop.f32.mrf.mxu1  ;;  %v2046_v2 = vpop.f32.mrf.mxu3  ;;  %3486 = vmatmul.msk.bf16.gmra.mxu3 %vm1083_vm2, %v3616_v44  ;;  %v3617_v44 = vld [vmem:[%s3689_s24 + $0x3e8] sm:$0xff] }
 0x1e3   : > { %4597 = vst [vmem:[#allocation65_spill] sm:$0xff] %v4161_v35  ;;  %v2349_v57 = vmax.f32 %v2046_v2, 0.0  ;;  %v3523_v35 = vld [vmem:[%s3689_s24 + $0xf8] sm:$0xff] }
 0x1e4   : > { %v4156_v16 = vpop.f32.mrf.mxu2 }
 0x1e5   : > { %4596 = vst [vmem:[#allocation64_spill] sm:$0xff] %v4156_v16  ;;  %v1589_v48 = vpop.f32.mrf.mxu0  ;;  %v4167_v16 = vpack.c.bf16 %v2349_v57, %v2348_v27 }
 0x1e6   : > { %v2166_v25 = vmax.f32 %v1589_v48, 0.0 }
 0x1e7   : > { %4599 = vst [vmem:[#allocation67_spill] sm:$0xff] %v4167_v16 }
 0x1e8   : > { %3391 = vmatmul.msk.bf16.gmra.mxu0 %vm1083_vm2, %v3521_v12  ;;  %v3522_v12 = vld [vmem:[%s3689_s24 + $0xf0] sm:$0xff] }
 0x1e9   : > { %3457 = vmatmul.msk.bf16.gmra.mxu2 %vm1083_vm2, %v3587_v9 }
 0x1ea   : > { %v4169_v18 = vpop.f32.mrf.mxu1  ;;  %v2049_v29 = vpop.f32.mrf.mxu3 }
 0x1eb   : > { %4600 = vst [vmem:[#allocation68_spill] sm:$0xff] %v4169_v18  ;;  %v2350_v2 = vmax.f32 %v2049_v29, 0.0 }
 0x1ec   : > { %v4165_v14 = vpop.f32.mrf.mxu2 }
 0x1ed   : > { %4598 = vst [vmem:[#allocation66_spill] sm:$0xff] %v4165_v14  ;;  %v1591_v5 = vpop.f32.mrf.mxu0 }
 0x1f2   : > { %v4175_v9 = vpop.f32.mrf.mxu1  ;;  %v2051_v8 = vpop.f32.mrf.mxu3  ;;  %3487 = vmatmul.msk.bf16.gmra.mxu3 %vm1083_vm2, %v3617_v44 }
 0x1f3   : > { %4602 = vst [vmem:[#allocation70_spill] sm:$0xff] %v4175_v9  ;;  %v2351_v14 = vmax.f32 %v2051_v8, 0.0 }
 0x1f4   : > { %v4172_v63 = vpop.f32.mrf.mxu2 }
 0x1f5   : > { %4601 = vst [vmem:[#allocation69_spill] sm:$0xff] %v4172_v63  ;;  %v1594_v39 = vpop.f32.mrf.mxu0  ;;  %v4181_v54 = vpack.c.bf16 %v2351_v14, %v2350_v2 }
 0x1f8   : > { %3392 = vmatmul.msk.bf16.gmra.mxu0 %vm1083_vm2, %v3522_v12 }
 0x1fa   : > { %v4183_v18 = vpop.f32.mrf.mxu1  ;;  %v2054_v63 = vpop.f32.mrf.mxu3 }
 0x1fb   : > { %4603 = vst [vmem:[#allocation71_spill] sm:$0xff] %v4183_v18  ;;  %v2352_v9 = vmax.f32 %v2054_v63, 0.0 }
 0x1fc   : > { %v4179_v27 = vpop.f32.mrf.mxu2 }
 0x1fd   : > { %v1596_v57 = vpop.f32.mrf.mxu0 }
 0x1fe   : > { %v2169_v45 = vmax.f32 %v1596_v57, 0.0 }
 0x202   : > { %v4189_v29 = vpop.f32.mrf.mxu1  ;;  %v2056_v8 = vpop.f32.mrf.mxu3  ;;  %3488 = vmatmul.msk.bf16.gmra.mxu3 %vm1083_vm2, %v3618_v53 }
 0x203   : > { %4604 = vst [vmem:[#allocation72_spill] sm:$0xff] %v4189_v29  ;;  %v2353_v44 = vmax.f32 %v2056_v8, 0.0  ;;  %v2167_v29 = vmax.f32 %v1591_v5, 0.0  ;;  %v3524_v8 = vld [vmem:[%s3689_s24 + $0x100] sm:$0xff] }
 0x204   : > { %v4186_v55 = vpop.f32.mrf.mxu2 }
 0x205   : > { %v1599_v12 = vpop.f32.mrf.mxu0  ;;  %v4195_v18 = vpack.c.bf16 %v2353_v44, %v2352_v9  ;;  %v2165_v9 = vmax.f32 %v4149_v31, 0.0  ;;  %v2401_v57 = vpack.c.bf16 %v2167_v29, %v2166_v25 }
 0x206   : > { %v2170_v60 = vmax.f32 %v1599_v12, 0.0 }
 0x208   : > { %3393 = vmatmul.msk.bf16.gmra.mxu0 %vm1083_vm2, %v3523_v35  ;;  %v2168_v35 = vmax.f32 %v1594_v39, 0.0 }
 0x20a   : > { %v4197_v6 = vpop.f32.mrf.mxu1  ;;  %v2059_v63 = vpop.f32.mrf.mxu3  ;;  %v2402_v16 = vpack.c.bf16 %v2169_v45, %v2168_v35  ;;  %v3619_v45 = vld [vmem:[%s3689_s24 + $0x3f8] sm:$0xff]  ;;  %v3525_v35 = vld [vmem:[%s3689_s24 + $0x108] sm:$0xff] }
 0x20c   : > { %v4193_v14 = vpop.f32.mrf.mxu2 }
 0x20d   : > { %v1601_v2 = vpop.f32.mrf.mxu0 }
 0x20e   : > { %v2171_v40 = vmax.f32 %v1601_v2, 0.0 }
 0x210   : > { %v2403_v22 = vpack.c.bf16 %v2171_v40, %v2170_v60  ;;  %v2164_v40 = vmax.f32 %v4138_v37, 0.0 }
 0x212   : > { %2598 = vmatpush.bf16.msrb.mxu3 %v2403_v22  ;;  %v4204_v60 = vpop.f32.mrf.mxu1  ;;  %v2354_v22 = vmax.f32 %v2059_v63, 0.0  ;;  %v2061_v5 = vpop.f32.mrf.mxu3  ;;  %v2400_v39 = vpack.c.bf16 %v2165_v9, %v2164_v40 }
 0x213   : > { %v2355_v12 = vmax.f32 %v2061_v5, 0.0  ;;  %3489 = vmatmul.msk.bf16.gmra.mxu3 %vm1083_vm2, %v3619_v45 }
 0x214   : > { %v4200_v49 = vpop.f32.mrf.mxu2 }
 0x215   : > { %v1604_v53 = vpop.f32.mrf.mxu0  ;;  %v4211_v25 = vpack.c.bf16 %v2355_v12, %v2354_v22  ;;  %v2217_v12 = vmax.f32 %v3902_v21, 0.0 }
 0x216   : > { %2599 = vmatpush.bf16.msrb.mxu3 %v2402_v16  ;;  %v2172_v16 = vmax.f32 %v1604_v53, 0.0  ;;  %v4226_v53 = vld [vmem:[%s4532_s2 + $0x8] sm:$0xff] }
 0x217   : > { %v2526_v40 = vunpack.c.l.b16 %v4226_v53 }
 0x218   : > { %3394 = vmatmul.msk.bf16.gmra.mxu0 %vm1083_vm2, %v3524_v8 }
 0x21a   : > { %2600 = vmatpush.bf16.msrb.mxu3 %v2401_v57  ;;  %v4215_v37 = vpop.f32.mrf.mxu1  ;;  %v2064_v2 = vpop.f32.mrf.mxu3  ;;  %v2218_v57 = vmax.f32 %v3912_v32, 0.0 }
 0x21b   : > { %v2356_v22 = vmax.f32 %v2064_v2, 0.0  ;;  %v2214_v2 = vmax.f32 %v3869_v3, 0.0  ;;  %v2210_v3 = vmax.f32 %v3835_v33, 0.0 }
 0x21c   : > { %v4208_v44 = vpop.f32.mrf.mxu2 }
 0x21d   : > { %v1606_v48 = vpop.f32.mrf.mxu0 }
 0x21e   : > { %v2173_v31 = vmax.f32 %v1606_v48, 0.0  ;;  %2601 = vmatpush.bf16.msrb.mxu3 %v2400_v39  ;;  %v2216_v39 = vmax.f32 %v3888_v51, 0.0 }
 0x220   : > { %v4213_v29 = vpack.c.bf16 %v2173_v31, %v2172_v16  ;;  %v2542_v31 = vpack.c.b16 %v2526_v40, %v2526_v40  ;;  %v2426_v51 = vpack.c.bf16 %v2217_v12, %v2216_v39 }
 0x222   : > { %2602 = vmatpush.bf16.msrb.mxu3 %v4131_v62  ;;  %v4228_v9 = vpop.f32.mrf.mxu1  ;;  %v2219_v62 = vmax.f32 %v3926_v43, 0.0  ;;  %v2066_v5 = vpop.f32.mrf.mxu3 }
 0x224   : > { %v4219_v63 = vpop.f32.mrf.mxu2  ;;  %v2427_v48 = vpack.c.bf16 %v2219_v62, %v2218_v57  ;;  %v3526_v57 = vld [vmem:[%s3689_s24 + $0x110] sm:$0xff] }
 0x225   : > { %v1609_v8 = vpop.f32.mrf.mxu0 }
 0x226   : > { %2603 = vmatpush.bf16.msrb.mxu3 %v4111_v15  ;;  %v2357_v15 = vmax.f32 %v2066_v5, 0.0  ;;  %v2174_v32 = vmax.f32 %v1609_v8, 0.0  ;;  %v2215_v5 = vmax.f32 %v3881_v24, 0.0  ;;  %v2212_v8 = vmax.f32 %v3851_v46, 0.0 }
 0x227   : > { %v2211_v24 = vmax.f32 %v3845_v38, 0.0  ;;  %v2208_v46 = vmax.f32 %v3815_v23, 0.0  ;;  %v2206_v38 = vmax.f32 %v3795_v10, 0.0  ;;  %v2204_v23 = vmax.f32 %v3777_v61, 0.0 }
 0x228   : > { %3395 = vmatmul.msk.bf16.gmra.mxu0 %vm1083_vm2, %v3525_v35  ;;  %v4239_v43 = vpack.c.bf16 %v2357_v15, %v2356_v22  ;;  %v2425_v40 = vpack.c.bf16 %v2215_v5, %v2214_v2  ;;  %v2207_v2 = vmax.f32 %v3805_v17, 0.0  ;;  %v2267_v10 = vmax.f32 %v3848_v42, 0.0 }
 0x229   : > { %v2263_v42 = vmax.f32 %v3810_v20, 0.0  ;;  %v4297_v20 = vld [vmem:[%s4532_s2 + $0x10] sm:$0xff] }
 0x22a   : > { %2604 = vmatpush.bf16.msrb.mxu3 %v4091_v34  ;;  %v4245_v21 = vpop.f32.mrf.mxu1  ;;  %v4255_v39 = vpop.f32.mrf.mxu3 }
 0x22c   : > { %v4234_v45 = vpop.f32.mrf.mxu2 }
 0x22d   : > { %v1611_v16 = vpop.f32.mrf.mxu0 }
 0x22e   : > { %v2175_v35 = vmax.f32 %v1611_v16, 0.0  ;;  %2605 = vmatpush.bf16.msrb.mxu3 %v4067_v1  ;;  %v2213_v1 = vmax.f32 %v3863_v59, 0.0  ;;  %v2209_v59 = vmax.f32 %v3827_v28, 0.0  ;;  %v2423_v16 = vpack.c.bf16 %v2211_v24, %v2210_v3 }
 0x22f   : > { %v2205_v28 = vmax.f32 %v3787_v4, 0.0  ;;  %v2266_v3 = vmax.f32 %v3843_v36, 0.0  ;;  %v2264_v24 = vmax.f32 %v3823_v26, 0.0  ;;  %v2262_v4 = vmax.f32 %v3803_v13, 0.0  ;;  %v3528_v13 = vld [vmem:[%s3689_s24 + $0x120] sm:$0xff] }
 0x230   : > { %v4241_v34 = vpack.c.bf16 %v2175_v35, %v2174_v32  ;;  %v2424_v15 = vpack.c.bf16 %v2213_v1, %v2212_v8  ;;  %v2422_v5 = vpack.c.bf16 %v2209_v59, %v2208_v46  ;;  %v2421_v1 = vpack.c.bf16 %v2207_v2, %v2206_v38 }
 0x231   : > { %2606 = vmatmul.bf16.vlgmr.msrb.gmra.mxu3 %v2542_v31  ;;  %v2420_v17 = vpack.c.bf16 %v2205_v28, %v2204_v23  ;;  %v2451_v46 = vpack.c.bf16 %v2267_v10, %v2266_v3  ;;  %v2261_v38 = vmax.f32 %v3792_v7, 0.0  ;;  %v2449_v2 = vpack.c.bf16 %v2263_v42, %v2262_v4  ;;  %v3588_v23 = vld [vmem:[%s3689_s24 + $0x300] sm:$0xff] }
 0x232   : > { %2637 = vmatpush.bf16.msra.mxu3 %v2427_v48  ;;  %v4257_v12 = vpop.f32.mrf.mxu1  ;;  %v2259_v7 = vmax.f32 %v3774_v58, 0.0  ;;  %3458 = vmatmul.msk.bf16.gmra.mxu2 %vm1083_vm2, %v3588_v23 }
 0x234   : > { %v4248_v62 = vpop.f32.mrf.mxu2 }
 0x235   : > { %v1614_v22 = vpop.f32.mrf.mxu0 }
 0x236   : > { %2638 = vmatpush.bf16.msra.mxu3 %v2426_v51  ;;  %v2176_v32 = vmax.f32 %v1614_v22, 0.0  ;;  %v4267_v51 = vpop.f32.mrf.mxu3 }
 0x238   : > { %3396 = vmatmul.msk.bf16.gmra.mxu0 %vm1083_vm2, %v3526_v57  ;;  %v3527_v57 = vld [vmem:[%s3689_s24 + $0x118] sm:$0xff] }
 0x23a   : > { %2639 = vmatpush.bf16.msra.mxu3 %v2425_v40  ;;  %v1806_v22 = vpop.f32.mrf.mxu1 }
 0x23c   : > { %v4259_v48 = vpop.f32.mrf.mxu2 }
 0x23d   : > { %v1616_v31 = vpop.f32.mrf.mxu0 }
 0x23e   : > { %2640 = vmatpush.bf16.msra.mxu3 %v2424_v15  ;;  %v2177_v35 = vmax.f32 %v1616_v31, 0.0  ;;  %v2265_v15 = vmax.f32 %v3830_v30, 0.0  ;;  %v4279_v59 = vpop.f32.mrf.mxu3  ;;  %v2260_v30 = vmax.f32 %v3785_v0, 0.0  ;;  %v2258_v0 = vmax.f32 %v3769_v52, 0.0 }
 0x240   : > { %v4263_v33 = vpack.c.bf16 %v2177_v35, %v2176_v32 }
 0x242   : > { %2641 = vmatpush.bf16.msra.mxu3 %v2423_v16  ;;  %v2450_v16 = vpack.c.bf16 %v2265_v15, %v2264_v24  ;;  %v1809_v26 = vpop.f32.mrf.mxu1  ;;  %v2257_v24 = vmax.f32 %v3760_v47, 0.0  ;;  %v2447_v15 = vpack.c.bf16 %v2259_v7, %v2258_v0  ;;  %v4329_v0 = vld [vmem:[%s4532_s2 + $0x20] sm:$0xff] }
 0x243   : > { %v2254_v58 = vmax.f32 %v1809_v26, 0.0  ;;  %v2306_v26 = vmax.f32 %v4234_v45, 0.0  ;;  %v2532_v7 = vunpack.c.l.b16 %v4329_v0 }
 0x244   : > { %v4270_v8 = vpop.f32.mrf.mxu2 }
 0x245   : > { %v1619_v40 = vpop.f32.mrf.mxu0 }
 0x246   : > { %2642 = vmatpush.bf16.msra.mxu3 %v2422_v5  ;;  %v2178_v31 = vmax.f32 %v1619_v40, 0.0  ;;  %v4289_v5 = vpop.f32.mrf.mxu3  ;;  %v2448_v40 = vpack.c.bf16 %v2261_v38, %v2260_v30 }
 0x248   : > { %3397 = vmatmul.msk.bf16.gmra.mxu0 %vm1083_vm2, %v3527_v57 }
 0x24a   : > { %2643 = vmatpush.bf16.msra.mxu3 %v2421_v1  ;;  %v2529_v1 = vunpack.c.h.b16 %v4297_v20  ;;  %v1811_v10 = vpop.f32.mrf.mxu1 }
 0x24b   : > { %v2255_v4 = vmax.f32 %v1811_v10, 0.0  ;;  %v2548_v10 = vpack.c.b16 %v2532_v7, %v2532_v7 }
 0x24c   : > { %v4281_v61 = vpop.f32.mrf.mxu2  ;;  %v2545_v3 = vpack.c.b16 %v2529_v1, %v2529_v1 }
 0x24d   : > { %v1621_v36 = vpop.f32.mrf.mxu0 }
 0x24e   : > { %2644 = vmatpush.bf16.msra.mxu3 %v2420_v17  ;;  %v2179_v32 = vmax.f32 %v1621_v36, 0.0  ;;  %v2256_v17 = vmax.f32 %v3755_v41, 0.0  ;;  %v3529_v41 = vld [vmem:[%s3689_s24 + $0x128] sm:$0xff] }
 0x250   : > { %v4285_v35 = vpack.c.bf16 %v2179_v32, %v2178_v31  ;;  %v2446_v42 = vpack.c.bf16 %v2257_v24, %v2256_v17  ;;  %v2253_v31 = vmax.f32 %v1806_v22, 0.0  ;;  %v2445_v32 = vpack.c.bf16 %v2255_v4, %v2254_v58 }
 0x251   : > { %2645 = vmatmul.bf16.vlgmr.msra.gmra.mxu3 %v2545_v3 }
 0x252   : > { %2676 = vmatpush.bf16.msrb.mxu3 %v2451_v46  ;;  %v4309_v46 = vpop.f32.mrf.mxu3 }
 0x254   : > { %v4292_v57 = vpop.f32.mrf.mxu2 }
 0x255   : > { %v4300_v28 = vpop.f32.mrf.mxu0 }
 0x256   : > { %2677 = vmatpush.bf16.msrb.mxu3 %v2450_v16  ;;  %v2252_v16 = vmax.f32 %v4257_v12, 0.0 }
 0x258   : > { %3398 = vmatmul.msk.bf16.gmra.mxu0 %vm1083_vm2, %v3528_v13  ;;  %v2444_v38 = vpack.c.bf16 %v2253_v31, %v2252_v16  ;;  %v2307_v13 = vmax.f32 %v4248_v62, 0.0  ;;  %v3530_v62 = vld [vmem:[%s3689_s24 + $0x130] sm:$0xff]  ;;  %v2311_v16 = vmax.f32 %v4292_v57, 0.0  ;;  %v3531_v57 = vld [vmem:[%s3689_s24 + $0x138] sm:$0xff] }
 0x25a   : > { %2678 = vmatpush.bf16.msrb.mxu3 %v2449_v2  ;;  %v4314_v30 = vpop.f32.mrf.mxu3  ;;  %v2471_v23 = vpack.c.bf16 %v2307_v13, %v2306_v26  ;;  %v2308_v26 = vmax.f32 %v4259_v48, 0.0  ;;  %v2309_v13 = vmax.f32 %v4270_v8, 0.0  ;;  %v2303_v48 = vmax.f32 %v4200_v49, 0.0 }
 0x25c   : > { %v1954_v52 = vpop.f32.mrf.mxu2 }
 0x25d   : > { %v4311_v36 = vpop.f32.mrf.mxu0  ;;  %v2312_v24 = vmax.f32 %v1954_v52, 0.0 }
 0x25e   : > { %2679 = vmatpush.bf16.msrb.mxu3 %v2448_v40 }
 0x262   : > { %2680 = vmatpush.bf16.msrb.mxu3 %v2447_v15  ;;  %v4322_v12 = vpop.f32.mrf.mxu3 }
 0x264   : > { %v1956_v47 = vpop.f32.mrf.mxu2 }
 0x265   : > { %v4317_v2 = vpop.f32.mrf.mxu0  ;;  %v2313_v15 = vmax.f32 %v1956_v47, 0.0 }
 0x266   : > { %2681 = vmatpush.bf16.msrb.mxu3 %v2446_v42  ;;  %v2310_v42 = vmax.f32 %v4281_v61, 0.0  ;;  %v2472_v61 = vpack.c.bf16 %v2309_v13, %v2308_v26 }
 0x267   : > { %v2474_v31 = vpack.c.bf16 %v2313_v15, %v2312_v24 }
 0x268   : > { %3399 = vmatmul.msk.bf16.gmra.mxu0 %vm1083_vm2, %v3529_v41  ;;  %v2359_v41 = vmax.f32 %v4267_v51, 0.0  ;;  %v2305_v51 = vmax.f32 %v4219_v63, 0.0  ;;  %v2301_v63 = vmax.f32 %v4186_v55, 0.0  ;;  %v2360_v55 = vmax.f32 %v4279_v59, 0.0 }
 0x269   : > { %v2180_v59 = vmax.f32 %v4300_v28, 0.0  ;;  %v2234_v28 = vmax.f32 %v4079_v50, 0.0 }
 0x26a   : > { %2682 = vmatpush.bf16.msrb.mxu3 %v2445_v32  ;;  %v4332_v40 = vpop.f32.mrf.mxu3  ;;  %v2358_v32 = vmax.f32 %v4255_v39, 0.0  ;;  %v2304_v39 = vmax.f32 %v4208_v44, 0.0  ;;  %v2300_v44 = vmax.f32 %v4179_v27, 0.0 }
 0x26c   : > { %v1959_v22 = vpop.f32.mrf.mxu2  ;;  %v2497_v52 = vpack.c.bf16 %v2359_v41, %v2358_v32  ;;  %v2470_v8 = vpack.c.bf16 %v2305_v51, %v2304_v39  ;;  %v2468_v32 = vpack.c.bf16 %v2301_v63, %v2300_v44  ;;  %v2361_v41 = vmax.f32 %v4289_v5, 0.0 }
 0x26d   : > { %v4324_v1 = vpop.f32.mrf.mxu0  ;;  %v2314_v45 = vmax.f32 %v1959_v22, 0.0  ;;  %v2473_v22 = vpack.c.bf16 %v2311_v16, %v2310_v42  ;;  %v2363_v42 = vmax.f32 %v4314_v30, 0.0 }
 0x26e   : > { %2683 = vmatpush.bf16.msrb.mxu3 %v2444_v38  ;;  %v2183_v26 = vmax.f32 %v4324_v1, 0.0  ;;  %v2498_v30 = vpack.c.bf16 %v2361_v41, %v2360_v55  ;;  %v4613_v55 = vld [vmem:[#allocation27_spill] sm:$0xff] }
 0x26f   : > { %v2225_v41 = vmax.f32 %v4613_v55, 0.0 }
 0x271   : > { %2684 = vmatmul.bf16.vlgmr.msrb.gmra.mxu3 %v2548_v10 }
 0x272   : > { %v4340_v38 = vpop.f32.mrf.mxu3 }
 0x274   : > { %v1961_v3 = vpop.f32.mrf.mxu2 }
 0x275   : > { %v1634_v17 = vpop.f32.mrf.mxu0  ;;  %v2315_v58 = vmax.f32 %v1961_v3, 0.0  ;;  %v4355_v3 = vld [vmem:[%s4532_s2] sm:$0xff] }
 0x276   : > { %v2524_v10 = vunpack.c.l.b16 %v4355_v3  ;;  %v2184_v27 = vmax.f32 %v1634_v17, 0.0  ;;  %v2181_v17 = vmax.f32 %v4311_v36, 0.0 }
 0x277   : > { %v2475_v4 = vpack.c.bf16 %v2315_v58, %v2314_v45  ;;  %v2362_v58 = vmax.f32 %v4309_v46, 0.0 }
 0x278   : > { %3400 = vmatmul.msk.bf16.gmra.mxu0 %vm1083_vm2, %v3530_v62  ;;  %v2302_v62 = vmax.f32 %v4193_v14, 0.0  ;;  %v2408_v5 = vpack.c.bf16 %v2181_v17, %v2180_v59  ;;  %v4614_v17 = vld [vmem:[#allocation19_spill] sm:$0xff]  ;;  %v4615_v59 = vld [vmem:[#allocation22_spill] sm:$0xff] }
 0x279   : > { %2715 = vmatpush.bf16.msra.mxu3 %v2475_v4  ;;  %v2540_v4 = vpack.c.b16 %v2524_v10, %v2524_v10  ;;  %v2499_v46 = vpack.c.bf16 %v2363_v42, %v2362_v58  ;;  %v4611_v42 = vld [vmem:[#allocation32_spill] sm:$0xff] }
 0x27a   : > { %v4344_v7 = vpop.f32.mrf.mxu3  ;;  %v2469_v15 = vpack.c.bf16 %v2303_v48, %v2302_v62  ;;  %v2527_v62 = vunpack.c.h.b16 %v4226_v53  ;;  %v2235_v48 = vmax.f32 %v4093_v56, 0.0  ;;  %v4605_v56 = vld [vmem:[#allocation39_spill] sm:$0xff]  ;;  %v4606_v53 = vld [vmem:[#allocation42_spill] sm:$0xff] }
 0x27b   : > { %2580 = vmatmul.bf16.vlgmr.msrb.gmra.mxu1 %v2540_v4 }
 0x27d   : > { %v1636_v47 = vpop.f32.mrf.mxu0  ;;  %2716 = vmatpush.bf16.msra.mxu3 %v2474_v31 }
 0x27e   : > { %v2185_v16 = vmax.f32 %v1636_v47, 0.0 }
 0x280   : > { %v2410_v13 = vpack.c.bf16 %v2185_v16, %v2184_v27  ;;  %v2227_v16 = vmax.f32 %v4611_v42, 0.0 }
 0x281   : > { %2717 = vmatpush.bf16.msra.mxu3 %v2473_v22 }
 0x282   : > { %v4361_v14 = vpop.f32.mrf.mxu3 }
 0x285   : > { %v1639_v45 = vpop.f32.mrf.mxu0  ;;  %2718 = vmatpush.bf16.msra.mxu3 %v2472_v61  ;;  %v2182_v61 = vmax.f32 %v4317_v2, 0.0 }
 0x286   : > { %v2186_v49 = vmax.f32 %v1639_v45, 0.0 }
 0x288   : > { %3401 = vmatmul.msk.bf16.gmra.mxu0 %vm1083_vm2, %v3531_v57  ;;  %v2409_v57 = vpack.c.bf16 %v2183_v26, %v2182_v61 }
 0x289   : > { %2719 = vmatpush.bf16.msra.mxu3 %v2471_v23 }
 0x28a   : > { %v4368_v47 = vpop.f32.mrf.mxu3 }
 0x28d   : > { %v1641_v24 = vpop.f32.mrf.mxu0  ;;  %2720 = vmatpush.bf16.msra.mxu3 %v2470_v8  ;;  %v2543_v8 = vpack.c.b16 %v2527_v62, %v2527_v62 }
 0x28e   : > { %v2187_v23 = vmax.f32 %v1641_v24, 0.0 }
 0x290   : > { %v2411_v31 = vpack.c.bf16 %v2187_v23, %v2186_v49 }
 0x291   : > { %2721 = vmatpush.bf16.msra.mxu3 %v2469_v15  ;;  %v4609_v15 = vld [vmem:[#allocation37_spill] sm:$0xff] }
 0x292   : > { %2611 = vmatpush.bf16.msra.mxu1 %v2411_v31  ;;  %v4374_v2 = vpop.f32.mrf.mxu3  ;;  %v2229_v58 = vmax.f32 %v4609_v15, 0.0 }
 0x295   : > { %v1644_v22 = vpop.f32.mrf.mxu0  ;;  %2722 = vmatpush.bf16.msra.mxu3 %v2468_v32  ;;  %v4612_v32 = vld [vmem:[#allocation24_spill] sm:$0xff] }
 0x296   : > { %2612 = vmatpush.bf16.msra.mxu1 %v2410_v13  ;;  %v2188_v1 = vmax.f32 %v1644_v22, 0.0  ;;  %v2224_v27 = vmax.f32 %v4612_v32, 0.0 }
 0x299   : > { %2754 = vmatpush.bf16.msrb.mxu3 %v2499_v46 }
 0x29a   : > { %2613 = vmatpush.bf16.msra.mxu1 %v2409_v57  ;;  %v2222_v57 = vmax.f32 %v4614_v17, 0.0  ;;  %v4627_v17 = vld [vmem:[#allocation13_spill] sm:$0xff] }
 0x29d   : > { %2755 = vmatpush.bf16.msrb.mxu3 %v2498_v30  ;;  %v1646_v45 = vpop.f32.mrf.mxu0 }
 0x29e   : > { %v2189_v39 = vmax.f32 %v1646_v45, 0.0  ;;  %2614 = vmatpush.bf16.msra.mxu1 %v2408_v5  ;;  %v2223_v5 = vmax.f32 %v4615_v59, 0.0  ;;  %v2430_v45 = vpack.c.bf16 %v2225_v41, %v2224_v27  ;;  %v4625_v27 = vld [vmem:[#allocation18_spill] sm:$0xff] }
 0x29f   : > { %v2277_v55 = vmax.f32 %v4625_v27, 0.0  ;;  %v4637_v27 = vld [vmem:[#allocation12_spill] sm:$0xff] }
 0x2a0   : > { %v4372_v51 = vpack.c.bf16 %v2189_v39, %v2188_v1  ;;  %v4616_v1 = vld [vmem:[#allocation14_spill] sm:$0xff]  ;;  %v2429_v62 = vpack.c.bf16 %v2223_v5, %v2222_v57  ;;  %v2275_v57 = vmax.f32 %v4627_v17, 0.0  ;;  %v4628_v5 = vld [vmem:[#allocation8_spill] sm:$0xff] }
 0x2a1   : > { %2756 = vmatpush.bf16.msrb.mxu3 %v2497_v52  ;;  %v4385_v52 = vpop.f32.mrf.mxu3  ;;  %v2220_v39 = vmax.f32 %v4616_v1, 0.0  ;;  %v4629_v1 = vld [vmem:[#allocation10_spill] sm:$0xff] }
 0x2a2   : > { %2615 = vmatpush.bf16.msra.mxu1 %v4285_v35  ;;  %v2232_v35 = vmax.f32 %v4056_v11, 0.0  ;;  %v4607_v11 = vld [vmem:[#allocation67_spill] sm:$0xff]  ;;  %v4639_v17 = vld [vmem:[#allocation6_spill] sm:$0xff] }
 0x2a5   : > { %2757 = vmatpush.bf16.msrb.mxu3 %v4239_v43  ;;  %v1649_v36 = vpop.f32.mrf.mxu0  ;;  %v2233_v43 = vmax.f32 %v4069_v19, 0.0  ;;  %v4608_v19 = vld [vmem:[#allocation34_spill] sm:$0xff] }
 0x2a6   : > { %2616 = vmatpush.bf16.msra.mxu1 %v4263_v33  ;;  %v2435_v33 = vpack.c.bf16 %v2235_v48, %v2234_v28  ;;  %v2228_v24 = vmax.f32 %v4608_v19, 0.0 }
 0x2a7   : > { %v2434_v63 = vpack.c.bf16 %v2233_v43, %v2232_v35  ;;  %v4415_v35 = vld [vmem:[%s4532_s2 + $0x18] sm:$0xff]  ;;  %v4618_v43 = vld [vmem:[#allocation30_spill] sm:$0xff] }
 0x2a8   : > { %v2432_v31 = vpack.c.bf16 %v2229_v58, %v2228_v24  ;;  %v4622_v24 = vld [vmem:[#allocation20_spill] sm:$0xff] }
 0x2a9   : > { %2758 = vmatpush.bf16.msrb.mxu3 %v4211_v25  ;;  %v2190_v25 = vmax.f32 %v1649_v36, 0.0  ;;  %v4398_v23 = vpop.f32.mrf.mxu3  ;;  %v4617_v36 = vld [vmem:[#allocation17_spill] sm:$0xff]  ;;  %v2278_v15 = vmax.f32 %v4622_v24, 0.0 }
 0x2aa   : > { %2617 = vmatpush.bf16.msra.mxu1 %v4241_v34  ;;  %v2231_v34 = vmax.f32 %v4606_v53, 0.0  ;;  %v2221_v28 = vmax.f32 %v4617_v36, 0.0 }
 0x2ad   : > { %2759 = vmatpush.bf16.msrb.mxu3 %v4195_v18  ;;  %v1651_v10 = vpop.f32.mrf.mxu0  ;;  %v2230_v18 = vmax.f32 %v4605_v56, 0.0 }
 0x2ae   : > { %v2191_v44 = vmax.f32 %v1651_v10, 0.0  ;;  %2618 = vmatpush.bf16.msra.mxu1 %v4213_v29 }
 0x2af   : > { %v2433_v49 = vpack.c.bf16 %v2231_v34, %v2230_v18  ;;  %v4620_v18 = vld [vmem:[#allocation25_spill] sm:$0xff]  ;;  %v4621_v34 = vld [vmem:[#allocation28_spill] sm:$0xff] }
 0x2b0   : > { %v4391_v50 = vpack.c.bf16 %v2191_v44, %v2190_v25  ;;  %v2530_v25 = vunpack.c.l.b16 %v4415_v35  ;;  %v2428_v44 = vpack.c.bf16 %v2221_v28, %v2220_v39  ;;  %v2280_v53 = vmax.f32 %v4620_v18, 0.0  ;;  %v4633_v18 = vld [vmem:[#allocation4_spill] sm:$0xff] }
 0x2b1   : > { %2760 = vmatpush.bf16.msrb.mxu3 %v4181_v54  ;;  %2619 = vmatmul.bf16.vlgmr.msra.gmra.mxu1 %v2543_v8  ;;  %v4610_v54 = vld [vmem:[#allocation29_spill] sm:$0xff]  ;;  %v4404_v61 = vpop.f32.mrf.mxu3  ;;  %v2282_v8 = vmax.f32 %v4618_v43, 0.0  ;;  %v2273_v39 = vmax.f32 %v4629_v1, 0.0 }
 0x2b2   : > { %2650 = vmatpush.bf16.msrb.mxu1 %v2435_v33  ;;  %v2226_v4 = vmax.f32 %v4610_v54, 0.0  ;;  %v4619_v33 = vld [vmem:[#allocation33_spill] sm:$0xff]  ;;  %v2546_v19 = vpack.c.b16 %v2530_v25, %v2530_v25  ;;  %v4632_v25 = vld [vmem:[#allocation2_spill] sm:$0xff] }
 0x2b3   : > { %v2283_v10 = vmax.f32 %v4619_v33, 0.0 }
 0x2b4   : > { %v2431_v46 = vpack.c.bf16 %v2227_v16, %v2226_v4 }
 0x2b5   : > { %2761 = vmatpush.bf16.msrb.mxu3 %v4607_v11  ;;  %v1654_v29 = vpop.f32.mrf.mxu0  ;;  %v2459_v11 = vpack.c.bf16 %v2283_v10, %v2282_v8  ;;  %v4631_v8 = vld [vmem:[#allocation7_spill] sm:$0xff] }
 0x2b6   : > { %2651 = vmatpush.bf16.msrb.mxu1 %v2434_v63  ;;  %v2192_v13 = vmax.f32 %v1654_v29, 0.0  ;;  %v2281_v63 = vmax.f32 %v4621_v34, 0.0  ;;  %v2271_v33 = vmax.f32 %v4631_v8, 0.0 }
 0x2b8   : > { %v2458_v54 = vpack.c.bf16 %v2281_v63, %v2280_v53  ;;  %v2269_v53 = vmax.f32 %v4633_v18, 0.0  ;;  %v2533_v63 = vunpack.c.h.b16 %v4329_v0 }
 0x2b9   : > { %v4420_v56 = vpop.f32.mrf.mxu3 }
 0x2ba   : > { %2652 = vmatpush.bf16.msrb.mxu1 %v2433_v49  ;;  %v4623_v49 = vld [vmem:[#allocation23_spill] sm:$0xff]  ;;  %v2374_v8 = vmax.f32 %v4420_v56, 0.0 }
 0x2bb   : > { %v2279_v29 = vmax.f32 %v4623_v49, 0.0 }
 0x2bd   : > { %v1656_v26 = vpop.f32.mrf.mxu0  ;;  %v2457_v41 = vpack.c.bf16 %v2279_v29, %v2278_v15  ;;  %v2549_v15 = vpack.c.b16 %v2533_v63, %v2533_v63  ;;  %v4635_v29 = vld [vmem:[#allocation21_spill] sm:$0xff] }
 0x2be   : > { %2653 = vmatpush.bf16.msrb.mxu1 %v2432_v31  ;;  %v2193_v22 = vmax.f32 %v1656_v26, 0.0  ;;  %v4624_v31 = vld [vmem:[#allocation15_spill] sm:$0xff] }
 0x2bf   : > { %v2276_v32 = vmax.f32 %v4624_v31, 0.0 }
 0x2c0   : > { %v4406_v30 = vpack.c.bf16 %v2193_v22, %v2192_v13  ;;  %v4626_v13 = vld [vmem:[#allocation11_spill] sm:$0xff] }
 0x2c1   : > { %v2274_v22 = vmax.f32 %v4626_v13, 0.0  ;;  %v2456_v59 = vpack.c.bf16 %v2277_v55, %v2276_v32  ;;  %v4638_v55 = vld [vmem:[#allocation9_spill] sm:$0xff] }
 0x2c2   : > { %2654 = vmatpush.bf16.msrb.mxu1 %v2431_v46  ;;  %v2111_v46 = vpop.f32.mrf.mxu3 }
 0x2c3   : > { %v2455_v36 = vpack.c.bf16 %v2275_v57, %v2274_v22 }
 0x2c5   : > { %v1659_v48 = vpop.f32.mrf.mxu0 }
 0x2c6   : > { %2655 = vmatpush.bf16.msrb.mxu1 %v2430_v45  ;;  %v2194_v4 = vmax.f32 %v1659_v48, 0.0  ;;  %v2272_v45 = vmax.f32 %v4628_v5, 0.0  ;;  %v4630_v48 = vld [vmem:[#allocation5_spill] sm:$0xff] }
 0x2c7   : > { %v2270_v43 = vmax.f32 %v4630_v48, 0.0 }
 0x2c8   : > { %v2454_v10 = vpack.c.bf16 %v2273_v39, %v2272_v45  ;;  %v4640_v45 = vld [vmem:[#allocation3_spill] sm:$0xff] }
 0x2c9   : > { %v2453_v34 = vpack.c.bf16 %v2271_v33, %v2270_v43  ;;  %v2375_v33 = vmax.f32 %v2111_v46, 0.0 }
 0x2ca   : > { %2656 = vmatpush.bf16.msrb.mxu1 %v2429_v62  ;;  %v2114_v62 = vpop.f32.mrf.mxu3 }
 0x2cb   : > { %v2376_v39 = vmax.f32 %v2114_v62, 0.0  ;;  %v2505_v18 = vpack.c.bf16 %v2375_v33, %v2374_v8  ;;  %v2370_v62 = vmax.f32 %v4374_v2, 0.0  ;;  %v4650_v8 = vld [vmem:[#allocation50_spill] sm:$0xff] }
 0x2cc   : > { %v2236_v33 = vmax.f32 %v4650_v8, 0.0  ;;  %v4669_v8 = vld [vmem:[#allocation57_spill] sm:$0xff] }
 0x2cd   : > { %v1661_v58 = vpop.f32.mrf.mxu0 }
 0x2ce   : > { %2657 = vmatpush.bf16.msrb.mxu1 %v2428_v44  ;;  %v2195_v42 = vmax.f32 %v1661_v58, 0.0  ;;  %v2268_v44 = vmax.f32 %v4632_v25, 0.0  ;;  %v4634_v58 = vld [vmem:[#allocation26_spill] sm:$0xff]  ;;  %v2372_v25 = vmax.f32 %v4398_v23, 0.0 }
 0x2d0   : > { %v4426_v16 = vpack.c.bf16 %v2195_v42, %v2194_v4  ;;  %v1964_v4 = vpop.f32.mrf.mxu2  ;;  %v4636_v42 = vld [vmem:[#allocation16_spill] sm:$0xff] }
 0x2d1   : > { %2658 = vmatmul.bf16.vlgmr.msrb.gmra.mxu1 %v2546_v19  ;;  %v2452_v19 = vpack.c.bf16 %v2269_v53, %v2268_v44  ;;  %v2316_v57 = vmax.f32 %v1964_v4, 0.0  ;;  %v2373_v44 = vmax.f32 %v4404_v61, 0.0  ;;  %v2368_v61 = vmax.f32 %v4361_v14, 0.0 }
 0x2d2   : > { %2689 = vmatpush.bf16.msra.mxu1 %v2459_v11  ;;  %v2116_v24 = vpop.f32.mrf.mxu3  ;;  %v2364_v14 = vmax.f32 %v4322_v12, 0.0  ;;  %v2248_v12 = vmax.f32 %v4204_v60, 0.0  ;;  %v4644_v60 = vld [vmem:[#allocation65_spill] sm:$0xff] }
 0x2d5   : > { %v4430_v26 = vpop.f32.mrf.mxu0 }
 0x2d6   : > { %2690 = vmatpush.bf16.msra.mxu1 %v2458_v54  ;;  %v2525_v54 = vunpack.c.h.b16 %v4355_v3 }
 0x2d8   : > { %v2541_v31 = vpack.c.b16 %v2525_v54, %v2525_v54  ;;  %v2369_v54 = vmax.f32 %v4368_v47, 0.0  ;;  %v2365_v47 = vmax.f32 %v4332_v40, 0.0  ;;  %v2249_v40 = vmax.f32 %v4215_v37, 0.0 }
 0x2d9   : > { %v2242_v37 = vmax.f32 %v4644_v60, 0.0 }
 0x2da   : > { %2691 = vmatpush.bf16.msra.mxu1 %v2457_v41  ;;  %v2119_v0 = vpop.f32.mrf.mxu3  ;;  %2593 = vmatmul.bf16.vlgmr.msrb.gmra.mxu2 %v2541_v31  ;;  %v1966_v41 = vpop.f32.mrf.mxu2  ;;  %v2367_v31 = vmax.f32 %v4344_v7, 0.0  ;;  %v2251_v7 = vmax.f32 %v4245_v21, 0.0  ;;  %v4642_v21 = vld [vmem:[#allocation70_spill] sm:$0xff] }
 0x2db   : > { %v2378_v5 = vmax.f32 %v2119_v0, 0.0  ;;  %v2502_v0 = vpack.c.bf16 %v2369_v54, %v2368_v61 }
 0x2dd   : > { %v4436_v28 = vpop.f32.mrf.mxu0 }
 0x2de   : > { %2692 = vmatpush.bf16.msra.mxu1 %v2456_v59  ;;  %v2317_v59 = vmax.f32 %v1966_v41, 0.0  ;;  %v2197_v2 = vmax.f32 %v4436_v28, 0.0 }
 0x2e0   : > { %v2476_v1 = vpack.c.bf16 %v2317_v59, %v2316_v57 }
 0x2e2   : > { %2693 = vmatpush.bf16.msra.mxu1 %v2455_v36  ;;  %v2121_v13 = vpop.f32.mrf.mxu3  ;;  %v2377_v36 = vmax.f32 %v2116_v24, 0.0  ;;  %v2371_v24 = vmax.f32 %v4385_v52, 0.0 }
 0x2e3   : > { %v2379_v3 = vmax.f32 %v2121_v13, 0.0  ;;  %v4643_v13 = vld [vmem:[#allocation71_spill] sm:$0xff] }
 0x2e5   : > { %v4443_v11 = vpop.f32.mrf.mxu0  ;;  %v2507_v48 = vpack.c.bf16 %v2379_v3, %v2378_v5  ;;  %v4647_v3 = vld [vmem:[#allocation63_spill] sm:$0xff] }
 0x2e6   : > { %2694 = vmatpush.bf16.msra.mxu1 %v2454_v10  ;;  %v2506_v10 = vpack.c.bf16 %v2377_v36, %v2376_v39  ;;  %v2198_v4 = vmax.f32 %v4443_v11, 0.0  ;;  %v4649_v36 = vld [vmem:[#allocation58_spill] sm:$0xff] }
 0x2ea   : > { %2695 = vmatpush.bf16.msra.mxu1 %v2453_v34  ;;  %v2504_v34 = vpack.c.bf16 %v2373_v44, %v2372_v25 }
 0x2ed   : > { %v1671_v49 = vpop.f32.mrf.mxu0 }
 0x2ee   : > { %2696 = vmatpush.bf16.msra.mxu1 %v2452_v19  ;;  %v2199_v23 = vmax.f32 %v1671_v49, 0.0 }
 0x2f0   : > { %v2417_v52 = vpack.c.bf16 %v2199_v23, %v2198_v4  ;;  %v4656_v4 = vld [vmem:[#allocation56_spill] sm:$0xff] }
 0x2f1   : > { %2697 = vmatmul.bf16.vlgmr.msra.gmra.mxu1 %v2549_v15 }
 0x2f2   : > { %2728 = vmatpush.bf16.msrb.mxu1 %v4634_v58  ;;  %v2503_v58 = vpack.c.bf16 %v2371_v24, %v2370_v62  ;;  %v4654_v62 = vld [vmem:[#allocation61_spill] sm:$0xff] }
 0x2f3   : > { %v2296_v24 = vmax.f32 %v4654_v62, 0.0 }
 0x2f5   : > { %v1674_v32 = vpop.f32.mrf.mxu0 }
 0x2f6   : > { %2729 = vmatpush.bf16.msrb.mxu1 %v4635_v29  ;;  %v2200_v46 = vmax.f32 %v1674_v32, 0.0  ;;  %v2196_v32 = vmax.f32 %v4430_v26, 0.0  ;;  %v2528_v26 = vunpack.c.l.b16 %v4297_v20  ;;  %v2244_v20 = vmax.f32 %v4642_v21, 0.0 }
 0x2f8   : > { %v2416_v49 = vpack.c.bf16 %v2197_v2, %v2196_v32  ;;  %v2294_v2 = vmax.f32 %v4656_v4, 0.0 }
 0x2fa   : > { %2730 = vmatpush.bf16.msrb.mxu1 %v4636_v42  ;;  %v2366_v42 = vmax.f32 %v4340_v38, 0.0  ;;  %v2250_v38 = vmax.f32 %v4228_v9, 0.0  ;;  %v2442_v9 = vpack.c.bf16 %v2249_v40, %v2248_v12 }
 0x2fc   : > { %v2501_v11 = vpack.c.bf16 %v2367_v31, %v2366_v42  ;;  %v2443_v28 = vpack.c.bf16 %v2251_v7, %v2250_v38  ;;  %v2514_v31 = vld [vmem:[%s4532_s2 + $0x30] sm:$0xff]  ;;  %v4660_v38 = vld [vmem:[#allocation47_spill] sm:$0xff] }
 0x2fd   : > { %v1676_v22 = vpop.f32.mrf.mxu0  ;;  %v2290_v7 = vmax.f32 %v4660_v38, 0.0 }
 0x2fe   : > { %2731 = vmatpush.bf16.msrb.mxu1 %v4637_v27  ;;  %v2201_v15 = vmax.f32 %v1676_v22, 0.0  ;;  %v2500_v27 = vpack.c.bf16 %v2365_v47, %v2364_v14 }
 0x300   : > { %v2418_v29 = vpack.c.bf16 %v2201_v15, %v2200_v46  ;;  %v4655_v46 = vld [vmem:[#allocation64_spill] sm:$0xff] }
 0x302   : > { %2732 = vmatpush.bf16.msrb.mxu1 %v4638_v55  ;;  %v2544_v55 = vpack.c.b16 %v2528_v26, %v2528_v26  ;;  %v4661_v26 = vld [vmem:[#allocation49_spill] sm:$0xff] }
 0x303   : > { %v2291_v12 = vmax.f32 %v4661_v26, 0.0 }
 0x305   : > { %v1679_v43 = vpop.f32.mrf.mxu0 }
 0x306   : > { %2733 = vmatpush.bf16.msrb.mxu1 %v4639_v17  ;;  %v2202_v63 = vmax.f32 %v1679_v43, 0.0  ;;  %v4645_v17 = vld [vmem:[#allocation68_spill] sm:$0xff] }
 0x307   : > { %v2243_v57 = vmax.f32 %v4645_v17, 0.0  ;;  %v4666_v17 = vld [vmem:[#allocation35_spill] sm:$0xff] }
 0x30a   : > { %2734 = vmatpush.bf16.msrb.mxu1 %v4640_v45  ;;  %v2241_v45 = vmax.f32 %v4647_v3, 0.0 }
 0x30d   : > { %v1681_v53 = vpop.f32.mrf.mxu0 }
 0x30e   : > { %2735 = vmatpush.bf16.msrb.mxu1 %v2476_v1  ;;  %v2203_v19 = vmax.f32 %v1681_v53, 0.0  ;;  %v4648_v1 = vld [vmem:[#allocation55_spill] sm:$0xff] }
 0x30f   : > { %v2238_v39 = vmax.f32 %v4648_v1, 0.0 }
 0x310   : > { %v2419_v56 = vpack.c.bf16 %v2203_v19, %v2202_v63  ;;  %v2531_v19 = vunpack.c.h.b16 %v4415_v35 }
 0x312   : > { %2767 = vmatpush.bf16.msra.mxu1 %v2507_v48  ;;  %2624 = vmatpush.bf16.msra.mxu2 %v2419_v56  ;;  %v2239_v48 = vmax.f32 %v4649_v36, 0.0  ;;  %v2513_v56 = vld [vmem:[%s4532_s2 + $0x28] sm:$0xff]  ;;  %v2581_v36 = vpop.f32.mrf.mxu1 }
 0x313   : > { %v2535_v61 = vunpack.c.h.b16 %v2513_v56  ;;  %v2534_v3 = vunpack.c.l.b16 %v2513_v56  ;;  %v2537_v56 = vunpack.c.h.b16 %v2514_v31 }
 0x314   : > { %v2437_v44 = vpack.c.bf16 %v2239_v48, %v2238_v39  ;;  %v2607_v48 = vpop.f32.mrf.mxu3 }
 0x315   : > { %v2551_v54 = vpack.c.b16 %v2535_v61, %v2535_v61  ;;  %v2550_v39 = vpack.c.b16 %v2534_v3, %v2534_v3 }
 0x316   : > { %2768 = vmatpush.bf16.msra.mxu1 %v2506_v10  ;;  %2625 = vmatpush.bf16.msra.mxu2 %v2418_v29  ;;  %v4651_v10 = vld [vmem:[#allocation53_spill] sm:$0xff]  ;;  %v2547_v29 = vpack.c.b16 %v2531_v19, %v2531_v19 }
 0x317   : > { %v2237_v25 = vmax.f32 %v4651_v10, 0.0  ;;  %2723 = vmatmul.bf16.vlgmr.msra.gmra.mxu3 %v2551_v54 }
 0x319   : > { %v2436_v15 = vpack.c.bf16 %v2237_v25, %v2236_v33  ;;  %v4670_v25 = vld [vmem:[#allocation52_spill] sm:$0xff] }
 0x31a   : > { %2769 = vmatpush.bf16.msra.mxu1 %v2505_v18  ;;  %2626 = vmatpush.bf16.msra.mxu2 %v2417_v52  ;;  %v4652_v18 = vld [vmem:[#allocation66_spill] sm:$0xff]  ;;  %v4657_v52 = vld [vmem:[#allocation59_spill] sm:$0xff]  ;;  %v2583_v33 = vpop.f32.mrf.mxu1 }
 0x31b   : > { %v2298_v53 = vmax.f32 %v4652_v18, 0.0  ;;  %v2295_v35 = vmax.f32 %v4657_v52, 0.0 }
 0x31c   : > { %v2609_v10 = vpop.f32.mrf.mxu3 }
 0x31d   : > { %v2465_v47 = vpack.c.bf16 %v2295_v35, %v2294_v2 }
 0x31e   : > { %2770 = vmatpush.bf16.msra.mxu1 %v2504_v34  ;;  %2627 = vmatpush.bf16.msra.mxu2 %v2416_v49  ;;  %v4653_v34 = vld [vmem:[#allocation69_spill] sm:$0xff]  ;;  %v4659_v49 = vld [vmem:[#allocation54_spill] sm:$0xff] }
 0x31f   : > { %v2299_v63 = vmax.f32 %v4653_v34, 0.0  ;;  %v2293_v14 = vmax.f32 %v4659_v49, 0.0 }
 0x321   : > { %v2467_v23 = vpack.c.bf16 %v2299_v63, %v2298_v53  ;;  %v4672_v63 = vld [vmem:[#allocation45_spill] sm:$0xff] }
 0x322   : > { %2771 = vmatpush.bf16.msra.mxu1 %v2503_v58  ;;  %2628 = vmatpush.bf16.msra.mxu2 %v4426_v16  ;;  %v4641_v16 = vld [vmem:[#allocation72_spill] sm:$0xff]  ;;  %v2297_v58 = vmax.f32 %v4655_v46, 0.0 }
 0x323   : > { %v2246_v41 = vmax.f32 %v4641_v16, 0.0  ;;  %v4663_v16 = vld [vmem:[#allocation46_spill] sm:$0xff] }
 0x324   : > { %v2466_v42 = vpack.c.bf16 %v2297_v58, %v2296_v24  ;;  %v4673_v24 = vld [vmem:[#allocation41_spill] sm:$0xff]  ;;  %v4674_v58 = vld [vmem:[#allocation36_spill] sm:$0xff]  ;;  %v2646_v61 = vpop.f32.mrf.mxu3 }
 0x326   : > { %2772 = vmatpush.bf16.msra.mxu1 %v2502_v0  ;;  %2629 = vmatpush.bf16.msra.mxu2 %v4406_v30  ;;  %v2247_v30 = vmax.f32 %v4197_v6, 0.0  ;;  %v2439_v6 = vpack.c.bf16 %v2243_v57, %v2242_v37  ;;  %v4658_v0 = vld [vmem:[#allocation51_spill] sm:$0xff]  ;;  %v2284_v57 = vmax.f32 %v4666_v17, 0.0 }
 0x327   : > { %v2292_v32 = vmax.f32 %v4658_v0, 0.0 }
 0x328   : > { %v2441_v22 = vpack.c.bf16 %v2247_v30, %v2246_v41  ;;  %v2289_v41 = vmax.f32 %v4663_v16, 0.0  ;;  %v2463_v30 = vpack.c.bf16 %v2291_v12, %v2290_v7 }
 0x329   : > { %v2464_v40 = vpack.c.bf16 %v2293_v14, %v2292_v32 }
 0x32a   : > { %2773 = vmatpush.bf16.msra.mxu1 %v2501_v11  ;;  %2630 = vmatpush.bf16.msra.mxu2 %v4391_v50  ;;  %v2245_v50 = vmax.f32 %v4643_v13, 0.0  ;;  %v2536_v11 = vunpack.c.l.b16 %v2514_v31 }
 0x32c   : > { %v2440_v59 = vpack.c.bf16 %v2245_v50, %v2244_v20  ;;  %v4664_v20 = vld [vmem:[#allocation40_spill] sm:$0xff]  ;;  %v4665_v50 = vld [vmem:[#allocation43_spill] sm:$0xff]  ;;  %v2648_v4 = vpop.f32.mrf.mxu3 }
 0x32d   : > { %v2286_v13 = vmax.f32 %v4664_v20, 0.0 }
 0x32e   : > { %2774 = vmatpush.bf16.msra.mxu1 %v2500_v27  ;;  %2631 = vmatpush.bf16.msra.mxu2 %v4372_v51  ;;  %v4646_v51 = vld [vmem:[#allocation60_spill] sm:$0xff]  ;;  %v2552_v27 = vpack.c.b16 %v2536_v11, %v2536_v11  ;;  %v2620_v34 = vpop.f32.mrf.mxu1 }
 0x32f   : > { %v2240_v5 = vmax.f32 %v4646_v51, 0.0 }
 0x330   : > { %2736 = vmatmul.bf16.vlgmr.msrb.gmra.mxu1 %v2552_v27 }
 0x331   : > { %2632 = vmatmul.bf16.vlgmr.msra.gmra.mxu2 %v2544_v55  ;;  %v2438_v43 = vpack.c.bf16 %v2241_v45, %v2240_v5 }
 0x332   : > { %2663 = vmatpush.bf16.msrb.mxu2 %v2443_v28  ;;  %v4662_v28 = vld [vmem:[#allocation44_spill] sm:$0xff] }
 0x333   : > { %v2288_v55 = vmax.f32 %v4662_v28, 0.0 }
 0x334   : > { %v2685_v52 = vpop.f32.mrf.mxu3 }
 0x335   : > { %v2462_v60 = vpack.c.bf16 %v2289_v41, %v2288_v55 }
 0x336   : > { %2664 = vmatpush.bf16.msrb.mxu2 %v2442_v9  ;;  %v2515_v9 = vld [vmem:[%s4532_s2 + $0x38] sm:$0xff]  ;;  %v2622_v46 = vpop.f32.mrf.mxu1 }
 0x337   : > { %v2538_v21 = vunpack.c.l.b16 %v2515_v9  ;;  %v2539_v45 = vunpack.c.h.b16 %v2515_v9 }
 0x339   : > { %v2554_v37 = vpack.c.b16 %v2538_v21, %v2538_v21 }
 0x33a   : > { %2665 = vmatpush.bf16.msrb.mxu2 %v2441_v22  ;;  %v2287_v22 = vmax.f32 %v4665_v50, 0.0 }
 0x33b   : > { %2762 = vmatmul.bf16.vlgmr.msrb.gmra.mxu3 %v2554_v37 }
 0x33c   : > { %v2461_v5 = vpack.c.bf16 %v2287_v22, %v2286_v13  ;;  %v2687_v14 = vpop.f32.mrf.mxu3 }
 0x33e   : > { %2666 = vmatpush.bf16.msrb.mxu2 %v2440_v59  ;;  %v4667_v59 = vld [vmem:[#allocation38_spill] sm:$0xff] }
 0x33f   : > { %v2285_v51 = vmax.f32 %v4667_v59, 0.0 }
 0x341   : > { %v2460_v1 = vpack.c.bf16 %v2285_v51, %v2284_v57 }
 0x342   : > { %2667 = vmatpush.bf16.msrb.mxu2 %v2439_v6  ;;  %v2555_v6 = vpack.c.b16 %v2539_v45, %v2539_v45 }
 0x344   : > { %2775 = vmatmul.bf16.vlgmr.msra.gmra.mxu1 %v2555_v6 }
 0x346   : > { %2668 = vmatpush.bf16.msrb.mxu2 %v2438_v43  ;;  %v4668_v43 = vld [vmem:[#allocation62_spill] sm:$0xff] }
 0x34a   : > { %2669 = vmatpush.bf16.msrb.mxu2 %v2437_v44  ;;  %v4671_v44 = vld [vmem:[#allocation48_spill] sm:$0xff] }
 0x34e   : > { %2670 = vmatpush.bf16.msrb.mxu2 %v2436_v15  ;;  %v2659_v54 = vpop.f32.mrf.mxu1 }
 0x351   : > { %2671 = vmatmul.bf16.vlgmr.msrb.gmra.mxu2 %v2547_v29  ;;  %v4675_v29 = vld [vmem:[#allocation31_spill] sm:$0xff] }
 0x352   : > { %2702 = vmatpush.bf16.msra.mxu2 %v2467_v23  ;;  %v2553_v23 = vpack.c.b16 %v2537_v56, %v2537_v56 }
 0x356   : > { %2703 = vmatpush.bf16.msra.mxu2 %v2466_v42  ;;  %v2661_v2 = vpop.f32.mrf.mxu1 }
 0x35a   : > { %2704 = vmatpush.bf16.msra.mxu2 %v2465_v47 }
 0x35d   : > { %v2594_v18 = vpop.f32.mrf.mxu2 }
 0x35e   : > { %2705 = vmatpush.bf16.msra.mxu2 %v2464_v40  ;;  %v2595_v53 = vadd.f32 %v2594_v18, %v2581_v36 }
 0x360   : > { %v2608_v19 = vadd.f32 %v2607_v48, %v2595_v53 }
 0x362   : > { %2706 = vmatpush.bf16.msra.mxu2 %v2463_v30  ;;  %v2621_v62 = vadd.f32 %v2620_v34, %v2608_v19 }
 0x365   : > { %v2596_v15 = vpop.f32.mrf.mxu2 }
 0x366   : > { %2707 = vmatpush.bf16.msra.mxu2 %v2462_v60 }
 0x36a   : > { %2708 = vmatpush.bf16.msra.mxu2 %v2461_v5 }
 0x36e   : > { %2709 = vmatpush.bf16.msra.mxu2 %v2460_v1  ;;  %v2698_v42 = vpop.f32.mrf.mxu1 }
 0x371   : > { %2710 = vmatmul.bf16.vlgmr.msra.gmra.mxu2 %v2550_v39 }
 0x372   : > { %2741 = vmatpush.bf16.msrb.mxu2 %v4668_v43 }
 0x376   : > { %2742 = vmatpush.bf16.msrb.mxu2 %v4669_v8  ;;  %v2700_v31 = vpop.f32.mrf.mxu1 }
 0x37a   : > { %2743 = vmatpush.bf16.msrb.mxu2 %v4670_v25 }
 0x37e   : > { %2744 = vmatpush.bf16.msrb.mxu2 %v4671_v44 }
 0x382   : > { %2745 = vmatpush.bf16.msrb.mxu2 %v4672_v63 }
 0x386   : > { %2746 = vmatpush.bf16.msrb.mxu2 %v4673_v24 }
 0x38a   : > { %2747 = vmatpush.bf16.msrb.mxu2 %v4674_v58 }
 0x38e   : > { %2748 = vmatpush.bf16.msrb.mxu2 %v4675_v29 }
 0x391   : > { %2749 = vmatmul.bf16.vlgmr.msrb.gmra.mxu2 %v2553_v23 }
 0x39a   : > { %v2724_v27 = vpop.f32.mrf.mxu3 }
 0x3a2   : > { %v2726_v28 = vpop.f32.mrf.mxu3 }
 0x3ad   : > { %v2737_v7 = vpop.f32.mrf.mxu1 }
 0x3b4   : > { %v2633_v35 = vpop.f32.mrf.mxu2 }
 0x3b5   : > { %v2634_v0 = vadd.f32 %v2633_v35, %v2621_v62  ;;  %v2739_v55 = vpop.f32.mrf.mxu1 }
 0x3b7   : > { %v2647_v32 = vadd.f32 %v2646_v61, %v2634_v0 }
 0x3b9   : > { %v2660_v49 = vadd.f32 %v2659_v54, %v2647_v32 }
 0x3bc   : > { %v2635_v47 = vpop.f32.mrf.mxu2 }
 0x3be   : > { %v2763_v16 = vpop.f32.mrf.mxu3 }
 0x3c1   : > { %v2776_v41 = vpop.f32.mrf.mxu1 }
 0x3c6   : > { %v2765_v30 = vpop.f32.mrf.mxu3 }
 0x3c9   : > { %v2778_v9 = vpop.f32.mrf.mxu1 }
 0x3d4   : > { %v2672_v11 = vpop.f32.mrf.mxu2 }
 0x3d5   : > { %v2673_v38 = vadd.f32 %v2672_v11, %v2660_v49 }
 0x3d7   : > { %v2686_v26 = vadd.f32 %v2685_v52, %v2673_v38 }
 0x3d9   : > { %v2699_v12 = vadd.f32 %v2698_v42, %v2686_v26 }
 0x3dc   : > { %v2674_v40 = vpop.f32.mrf.mxu2 }
 0x3f4   : > { %v2711_v21 = vpop.f32.mrf.mxu2 }
 0x3f5   : > { %v2712_v13 = vadd.f32 %v2711_v21, %v2699_v12 }
 0x3f7   : > { %v2725_v50 = vadd.f32 %v2724_v27, %v2712_v13 }
 0x3f9   : > { %v2738_v22 = vadd.f32 %v2737_v7, %v2725_v50 }
 0x3fc   : > { %v2713_v20 = vpop.f32.mrf.mxu2 }
 0x414   : > { %v2750_v60 = vpop.f32.mrf.mxu2 }
 0x415   : > { %v2751_v37 = vadd.f32 %v2750_v60, %v2738_v22 }
 0x417   : > { %v2764_v17 = vadd.f32 %v2763_v16, %v2751_v37 }
 0x419   : > { %v2777_v57 = vadd.f32 %v2776_v41, %v2764_v17 }
 0x41b   : > { %2780 = vst [vmem:[%s170_s19] sm:$0xff] %v2777_v57 }
 0x41c   : > { %v2752_v59 = vpop.f32.mrf.mxu2 }
 0x41d PF: > { %s13_s12 = sadd.s32 1, %s3643_s12  }
 0x41e   : > { %p10_p5 = scmp.ge.s32.totalorder %s13_s12, 4  }
 0x420   :  { %12 = sbr.rel (!%p10_p5) target bundleno = 1 (0x1), region = 62 }

</bundles_post_ra>
